<compile_context>
chip_gen: v7x
topology: tpu7x:2x2x1
jax: 0.10.0
libtpu: 0.0.40
codegen_flags: <defaults>
</compile_context>

<pallas_src>
import functools

import jax
import jax.numpy as jnp
import numpy as np
from jax import lax
from jax.experimental import pallas as pl
from jax.experimental.pallas import tpu as pltpu


def _round_up(x, m):
    return ((x + m - 1) // m) * m


# ----------------------------------------------------------------------------
# Pallas kernel: serial LSTM recurrence for one layer, grid over chunks of Tc
# timesteps. Gate order follows PyTorch: [i, f, g, o].
# ----------------------------------------------------------------------------
def _lstm_recurrence_kernel(gx_ref, whh_ref, out_ref, hT_ref, cT_ref,
                            *, seq_len, seq_len_padded):
    step = pl.program_id(0)
    Tc, Bp, G = gx_ref.shape
    Hp = G // 4
    needs_mask = (seq_len_padded != seq_len)      # static Python bool

    # hT_ref / cT_ref have constant-index output BlockSpecs -> resident in VMEM
    # across the whole grid; they double as the h/c carry between chunks and
    # are (re)written every chunk.
    @pl.when(step == 0)
    def _init():
        hT_ref[...] = jnp.zeros_like(hT_ref)
        cT_ref[...] = jnp.zeros_like(cT_ref)

    def body(t, carry):
        h, c = carry
        whh = whh_ref[...]                        # resident (Hp, 4Hp)
        gates = gx_ref[t] + jnp.dot(h.astype(whh.dtype), whh,
                                    preferred_element_type=jnp.float32)
        # Hp is a multiple of 128 -> each gate slice is vreg-aligned (no XLU).
        i_g = jax.nn.sigmoid(gates[:, 0 * Hp:1 * Hp])
        f_g = jax.nn.sigmoid(gates[:, 1 * Hp:2 * Hp])
        g_g = jnp.tanh(gates[:, 2 * Hp:3 * Hp])
        o_g = jax.nn.sigmoid(gates[:, 3 * Hp:4 * Hp])
        c_new = f_g * c + i_g * g_g
        h_new = o_g * jnp.tanh(c_new)
        if needs_mask:  # only traced when T was padded up to a chunk multiple
            valid = (step * Tc + t) < seq_len
            h_new = jnp.where(valid, h_new, h)
            c_new = jnp.where(valid, c_new, c)
        out_ref[t] = h_new
        return h_new, c_new

    # fori_loop(unroll=True): bounded live ranges, full LLO visibility.
    h, c = lax.fori_loop(0, Tc, body, (hT_ref[...], cT_ref[...]), unroll=True)
    hT_ref[...] = h
    cT_ref[...] = c


def _lstm_layer_recurrence(gx_p, whh_p, *, seq_len, time_chunk):
    """Serial LSTM recurrence given the precomputed input projection.

    gx_p  : (Tp, Bp, 4*Hp) f32  -- x @ W_ih^T + (b_ih + b_hh), padded/aligned
    whh_p : (Hp, 4*Hp)          -- W_hh^T, gate-column padded (f32 or bf16)
    Returns (out_seq (Tp,Bp,Hp), h_T (Bp,Hp), c_T (Bp,Hp)), all still padded;
    the caller slices padding off exactly once at the very end.
    """
    Tp, Bp, G = gx_p.shape
    Hp = G // 4
    Tc = time_chunk
    assert Tp % Tc == 0
    n_chunks = Tp // Tc

    kernel = functools.partial(_lstm_recurrence_kernel,
                               seq_len=seq_len, seq_len_padded=Tp)

    out_shapes = (
        jax.ShapeDtypeStruct((Tp, Bp, Hp), jnp.float32),
        jax.ShapeDtypeStruct((Bp, Hp), jnp.float32),
        jax.ShapeDtypeStruct((Bp, Hp), jnp.float32),
    )

    grid_spec = pltpu.PrefetchScalarGridSpec(
        num_scalar_prefetch=0,
        grid=(n_chunks,),
        in_specs=[
            # Precomputed input projection, streamed per time-chunk; its DMA
            # hides behind the recurrence of the previous chunk.
            pl.BlockSpec((Tc, Bp, G), lambda s: (s, 0, 0)),
            # W_hh^T: constant index map -> resident; single-buffered so it
            # doesn't get a useless 2x VMEM allocation (matters at Hp >= 512
            # on v7x's 64 MiB VMEM / v5e's 16 MiB scoped default).
            pl.BlockSpec((Hp, G), lambda s: (0, 0),
                         pipeline_mode=pl.Buffered(1)),
        ],
        out_specs=[
            pl.BlockSpec((Tc, Bp, Hp), lambda s: (s, 0, 0)),    # per-step h
            pl.BlockSpec((Bp, Hp), lambda s: (0, 0)),           # final h (resident)
            pl.BlockSpec((Bp, Hp), lambda s: (0, 0)),           # final c (resident)
        ],
    )

    # Explicit VMEM budget: every buffer accounted with 2x headroom,
    # floor 16 MiB, cap 64 MiB (safe across v5e / v6e / v7x).
    w_bytes = jnp.dtype(whh_p.dtype).itemsize
    est = (2 * Tc * Bp * G * 4            # gx input (double-buffered)
           + Hp * G * w_bytes             # W_hh (single-buffered)
           + 2 * Tc * Bp * Hp * 4         # out_seq (double-buffered)
           + 2 * 2 * Bp * Hp * 4)         # resident hT / cT
    vmem_limit = int(min(max(2 * est, 16 * 1024 * 1024), 64 * 1024 * 1024))

    return pl.pallas_call(
        kernel,
        out_shape=out_shapes,
        grid_spec=grid_spec,
        compiler_params=pltpu.CompilerParams(
            dimension_semantics=("arbitrary",),     # time recurrence is serial
            vmem_limit_bytes=vmem_limit),
    )(gx_p, whh_p)


# ----------------------------------------------------------------------------
# Parameters: init (PyTorch-style layout) + one-time prep (padded/transposed)
# ----------------------------------------------------------------------------
def init_encoder_params(key, input_dim, emb_dim, hid_dim, n_layers):
    params = {}
    k_emb, key = jax.random.split(key)
    # nn.Embedding default: N(0, 1)
    params["embedding"] = jax.random.normal(k_emb, (input_dim, emb_dim), jnp.float32)

    k = 1.0 / np.sqrt(hid_dim)
    layers = []
    for l in range(n_layers):
        din = emb_dim if l == 0 else hid_dim
        key, k1, k2, k3, k4 = jax.random.split(key, 5)
        layers.append(dict(
            w_ih=jax.random.uniform(k1, (4 * hid_dim, din), jnp.float32, -k, k),
            w_hh=jax.random.uniform(k2, (4 * hid_dim, hid_dim), jnp.float32, -k, k),
            b_ih=jax.random.uniform(k3, (4 * hid_dim,), jnp.float32, -k, k),
            b_hh=jax.random.uniform(k4, (4 * hid_dim,), jnp.float32, -k, k),
        ))
    params["layers"] = layers
    return params


def _pad_gate_cols(w_t, hid_dim, hid_pad):
    """(rows, 4*H) -> (rows, 4*Hp): pad each gate's columns to Hp lanes."""
    rows = w_t.shape[0]
    w4 = w_t.reshape(rows, 4, hid_dim)
    w4 = jnp.pad(w4, ((0, 0), (0, 0), (0, hid_pad - hid_dim)))
    return w4.reshape(rows, 4 * hid_pad)


def prepare_encoder_params(params, *, matmul_dtype=jnp.float32):
    """One-time transpose/pad of weights into MXU/lane-friendly layout.

    matmul_dtype=jnp.bfloat16 is recommended on v6e/v7x (halves W_hh VMEM/DMA
    and per-step MXU passes) but relaxes the f32 1e-5 tolerance, so the default
    stays f32 for this correctness test.
    """
    hid_dim = params["layers"][0]["w_hh"].shape[1]
    Hp = _round_up(hid_dim, 128)
    layers = []
    for l, lp in enumerate(params["layers"]):
        din = lp["w_ih"].shape[1]
        w_ih_t = _pad_gate_cols(jnp.transpose(lp["w_ih"]), hid_dim, Hp)   # (din, 4Hp)
        if l > 0:
            # Layers >= 1 consume the *padded* (Hp-lane) activation of the
            # previous layer directly; zero-pad the extra input rows.
            w_ih_t = jnp.pad(w_ih_t, ((0, Hp - din), (0, 0)))             # (Hp, 4Hp)
        w_hh_t = _pad_gate_cols(jnp.transpose(lp["w_hh"]), hid_dim, Hp)   # (H, 4Hp)
        w_hh_t = jnp.pad(w_hh_t, ((0, Hp - hid_dim), (0, 0)))             # (Hp, 4Hp)
        bias = jnp.pad((lp["b_ih"] + lp["b_hh"]).reshape(4, hid_dim),
                       ((0, 0), (0, Hp - hid_dim))).reshape(4 * Hp)
        layers.append(dict(w_ih_t=w_ih_t,
                           w_hh_t=w_hh_t.astype(matmul_dtype),
                           bias=bias))
    return dict(embedding=params["embedding"], layers=layers,
                hid_dim=hid_dim, Hp=Hp)


# ----------------------------------------------------------------------------
# Encoder forward
# ----------------------------------------------------------------------------
def encoder_forward(prepared, src, *, time_chunk=8):
    """src: (T, B) int32 -> (hidden, cell), each (n_layers, B, H).

    time_chunk is a per-generation tuning knob: larger on v5e/v6e (128 MiB
    VMEM) for long sequences; keep 2*(Tc*Bp*4Hp*4B) + out block within the
    scoped limit on v7x (64 MiB).
    """
    hid_dim, Hp = prepared["hid_dim"], prepared["Hp"]
    T, B = src.shape
    Bp = _round_up(B, 8)
    Tc = min(time_chunk, T)
    Tp = _round_up(T, Tc)

    # Embedding lookup (gather) + eval-mode dropout (identity): plain-JAX glue.
    x = jnp.take(prepared["embedding"], src, axis=0)          # (T, B, E)

    hs, cs = [], []
    x_padded = False
    for lp in prepared["layers"]:
        # Hoisted input projection: one large-M XLA matmul (bias folded in),
        # off the serial critical path; result streams into the kernel.
        if not x_padded:
            gx = (x.reshape(T * B, -1) @ lp["w_ih_t"]
                  + lp["bias"]).reshape(T, B, 4 * Hp)
            gx = jnp.pad(gx, ((0, Tp - T), (0, Bp - B), (0, 0)))
        else:
            # Padded activations flow between layers unchanged (no slice +
            # re-pad HBM round trips): x is (Tp, Bp, Hp), w_ih_t is (Hp, 4Hp).
            gx = (x.reshape(Tp * Bp, Hp) @ lp["w_ih_t"]
                  + lp["bias"]).reshape(Tp, Bp, 4 * Hp)
        out_p, h_T, c_T = _lstm_layer_recurrence(
            gx, lp["w_hh_t"], seq_len=T, time_chunk=Tc)
        x, x_padded = out_p, True
        hs.append(h_T)
        cs.append(c_T)

    # Slice padding off exactly once, at the very end.
    hidden = jnp.stack(hs, axis=0)[:, :B, :hid_dim]
    cell = jnp.stack(cs, axis=0)[:, :B, :hid_dim]
    return hidden, cell


# ----------------------------------------------------------------------------
# Pure-JAX reference (for correctness check)
# ----------------------------------------------------------------------------
def encoder_forward_ref(params, src):
    x = jnp.take(params["embedding"], src, axis=0)
    T, B, _ = x.shape
    hs, cs = [], []
    for lp in params["layers"]:
        H = lp["w_hh"].shape[1]
        h = jnp.zeros((B, H), jnp.float32)
        c = jnp.zeros((B, H), jnp.float32)
        outs = []
        for t in range(T):
            gates = (x[t] @ lp["w_ih"].T + h @ lp["w_hh"].T
                     + lp["b_ih"] + lp["b_hh"])
            i_g = jax.nn.sigmoid(gates[:, 0 * H:1 * H])
            f_g = jax.nn.sigmoid(gates[:, 1 * H:2 * H])
            g_g = jnp.tanh(gates[:, 2 * H:3 * H])
            o_g = jax.nn.sigmoid(gates[:, 3 * H:4 * H])
            c = f_g * c + i_g * g_g
            h = o_g * jnp.tanh(c)
            outs.append(h)
        x = jnp.stack(outs, axis=0)
        hs.append(h)
        cs.append(c)
    return jnp.stack(hs, axis=0), jnp.stack(cs, axis=0)


if __name__ == "__main__":
    INPUT_DIM = 20    # vocab size
    EMB_DIM = 32
    HID_DIM = 32
    N_LAYERS = 2
    SEQ_LEN = 8
    BATCH = 2

    key = jax.random.PRNGKey(0)
    k_params, k_src = jax.random.split(key)
    params = init_encoder_params(k_params, INPUT_DIM, EMB_DIM, HID_DIM, N_LAYERS)
    prepared = prepare_encoder_params(params)     # one-time weight prep
    src = jax.random.randint(k_src, (SEQ_LEN, BATCH), 0, INPUT_DIM, dtype=jnp.int32)

    hidden, cell = encoder_forward(prepared, src)
    jax.block_until_ready((hidden, cell))

    hidden_ref, cell_ref = encoder_forward_ref(params, src)
    assert hidden.shape == (N_LAYERS, BATCH, HID_DIM)
    assert cell.shape == (N_LAYERS, BATCH, HID_DIM)
    np.testing.assert_allclose(np.asarray(hidden), np.asarray(hidden_ref),
                               rtol=1e-5, atol=1e-5)
    np.testing.assert_allclose(np.asarray(cell), np.asarray(cell_ref),
                               rtol=1e-5, atol=1e-5)

    print("KERNEL_OK")
</pallas_src>

<mosaic_0001>
module attributes {stable_mosaic.version = 11 : i64} {
  func.func @_lstm_recurrence_kernel(%arg0: i32, %arg1: memref<8x8x512xf32, #tpu.memory_space<vmem>>, %arg2: memref<128x512xf32, #tpu.memory_space<vmem>>, %arg3: memref<8x8x128xf32, #tpu.memory_space<vmem>>, %arg4: memref<8x128xf32, #tpu.memory_space<vmem>>, %arg5: memref<8x128xf32, #tpu.memory_space<vmem>>) attributes {dimension_semantics = [#tpu.dimension_semantics<arbitrary>], iteration_bounds = array<i64: 1>, scalar_prefetch = 0 : i64, scratch_operands = 0 : i64, tpu.core_type = #tpu.core_type<tc>, window_params = [{transform_indices = @transform_0, window_bounds = array<i64: 8, 8, 512>}, {pipeline_mode = #tpu.pipeline_mode<synchronous>, transform_indices = @transform_1, window_bounds = array<i64: 128, 512>}, {transform_indices = @transform_2, window_bounds = array<i64: 8, 8, 128>}, {pipeline_mode = #tpu.pipeline_mode<synchronous>, transform_indices = @transform_3, window_bounds = array<i64: 8, 128>}, {pipeline_mode = #tpu.pipeline_mode<synchronous>, transform_indices = @transform_4, window_bounds = array<i64: 8, 128>}]} {
    %c0_i32 = arith.constant 0 : i32
    %0 = arith.cmpi eq, %arg0, %c0_i32 : i32
    %1 = arith.extui %0 : i1 to i32
    %c0_i32_0 = arith.constant 0 : i32
    %2 = arith.cmpi ne, %1, %c0_i32_0 : i32
    scf.if %2 {
      %cst_88 = arith.constant 0.000000e+00 : f32
      %287 = vector.broadcast %cst_88 : f32 to vector<8x128xf32>
      %c0_89 = arith.constant 0 : index
      %c0_90 = arith.constant 0 : index
      %288 = vector.load %arg4[%c0_89, %c0_90] : memref<8x128xf32, #tpu.memory_space<vmem>>, vector<8x128xf32>
      tpu.vector_store %arg4[%c0_89, %c0_90], %287 {strides = array<i32>} : memref<8x128xf32, #tpu.memory_space<vmem>>, vector<8x128xf32>,
      %cst_91 = arith.constant 0.000000e+00 : f32
      %289 = vector.broadcast %cst_91 : f32 to vector<8x128xf32>
      %c0_92 = arith.constant 0 : index
      %c0_93 = arith.constant 0 : index
      %290 = vector.load %arg5[%c0_92, %c0_93] : memref<8x128xf32, #tpu.memory_space<vmem>>, vector<8x128xf32>
      tpu.vector_store %arg5[%c0_92, %c0_93], %289 {strides = array<i32>} : memref<8x128xf32, #tpu.memory_space<vmem>>, vector<8x128xf32>,
    } else {
    }
    %c0 = arith.constant 0 : index
    %c0_1 = arith.constant 0 : index
    %3 = vector.load %arg4[%c0, %c0_1] : memref<8x128xf32, #tpu.memory_space<vmem>>, vector<8x128xf32>
    %c0_2 = arith.constant 0 : index
    %c0_3 = arith.constant 0 : index
    %4 = vector.load %arg5[%c0_2, %c0_3] : memref<8x128xf32, #tpu.memory_space<vmem>>, vector<8x128xf32>
    %c0_i32_4 = arith.constant 0 : i32
    %c0_5 = arith.constant 0 : index
    %c0_6 = arith.constant 0 : index
    %5 = vector.load %arg2[%c0_5, %c0_6] : memref<128x512xf32, #tpu.memory_space<vmem>>, vector<128x512xf32>
    %6 = arith.index_cast %c0_i32_4 : i32 to index
    %c0_7 = arith.constant 0 : index
    %c0_8 = arith.constant 0 : index
    %7 = vector.load %arg1[%6, %c0_7, %c0_8] : memref<8x8x512xf32, #tpu.memory_space<vmem>>, vector<1x8x512xf32>
    %8 = vector.shape_cast %7 : vector<1x8x512xf32> to vector<8x512xf32>
    %cst = arith.constant dense<0.000000e+00> : vector<8x512xf32>
    %9 = tpu.matmul %3, %5, %cst {dimension_numbers = #tpu.dot_dimension_numbers<[1], [0], [0], [1], [0, 0, 1, 1], [], []>} : vector<8x128xf32>, vector<128x512xf32>, vector<8x512xf32> -> vector<8x512xf32>
    %10 = arith.addf %8, %9 : vector<8x512xf32>
    %11 = vector.extract_strided_slice %10 {offsets = [0, 0], sizes = [8, 128], strides = [1, 1]} : vector<8x512xf32> to vector<8x128xf32>
    %12 = arith.negf %11 : vector<8x128xf32>
    %13 = math.exp %12 : vector<8x128xf32>
    %cst_9 = arith.constant 1.000000e+00 : f32
    %14 = vector.broadcast %cst_9 : f32 to vector<8x128xf32>
    %15 = arith.addf %14, %13 : vector<8x128xf32>
    %16 = arith.divf %14, %15 : vector<8x128xf32>
    %17 = vector.extract_strided_slice %10 {offsets = [0, 128], sizes = [8, 128], strides = [1, 1]} : vector<8x512xf32> to vector<8x128xf32>
    %18 = arith.negf %17 : vector<8x128xf32>
    %19 = math.exp %18 : vector<8x128xf32>
    %cst_10 = arith.constant 1.000000e+00 : f32
    %20 = vector.broadcast %cst_10 : f32 to vector<8x128xf32>
    %21 = arith.addf %20, %19 : vector<8x128xf32>
    %22 = arith.divf %20, %21 : vector<8x128xf32>
    %23 = vector.extract_strided_slice %10 {offsets = [0, 256], sizes = [8, 128], strides = [1, 1]} : vector<8x512xf32> to vector<8x128xf32>
    %24 = math.tanh %23 : vector<8x128xf32>
    %25 = vector.extract_strided_slice %10 {offsets = [0, 384], sizes = [8, 128], strides = [1, 1]} : vector<8x512xf32> to vector<8x128xf32>
    %26 = arith.negf %25 : vector<8x128xf32>
    %27 = math.exp %26 : vector<8x128xf32>
    %cst_11 = arith.constant 1.000000e+00 : f32
    %28 = vector.broadcast %cst_11 : f32 to vector<8x128xf32>
    %29 = arith.addf %28, %27 : vector<8x128xf32>
    %30 = arith.divf %28, %29 : vector<8x128xf32>
    %31 = arith.mulf %22, %4 : vector<8x128xf32>
    %32 = arith.mulf %16, %24 : vector<8x128xf32>
    %33 = arith.addf %31, %32 : vector<8x128xf32>
    %34 = math.tanh %33 : vector<8x128xf32>
    %35 = arith.mulf %30, %34 : vector<8x128xf32>
    %36 = arith.index_cast %c0_i32_4 : i32 to index
    %c0_12 = arith.constant 0 : index
    %c0_13 = arith.constant 0 : index
    %37 = vector.load %arg3[%36, %c0_12, %c0_13] : memref<8x8x128xf32, #tpu.memory_space<vmem>>, vector<1x8x128xf32>
    %38 = vector.shape_cast %37 : vector<1x8x128xf32> to vector<8x128xf32>
    %39 = vector.shape_cast %35 : vector<8x128xf32> to vector<1x8x128xf32>
    tpu.vector_store %arg3[%36, %c0_12, %c0_13], %39 {strides = array<i32>} : memref<8x8x128xf32, #tpu.memory_space<vmem>>, vector<1x8x128xf32>,
    %c1_i32 = arith.constant 1 : i32
    %c0_14 = arith.constant 0 : index
    %c0_15 = arith.constant 0 : index
    %40 = vector.load %arg2[%c0_14, %c0_15] : memref<128x512xf32, #tpu.memory_space<vmem>>, vector<128x512xf32>
    %41 = arith.index_cast %c1_i32 : i32 to index
    %c0_16 = arith.constant 0 : index
    %c0_17 = arith.constant 0 : index
    %42 = vector.load %arg1[%41, %c0_16, %c0_17] : memref<8x8x512xf32, #tpu.memory_space<vmem>>, vector<1x8x512xf32>
    %43 = vector.shape_cast %42 : vector<1x8x512xf32> to vector<8x512xf32>
    %cst_18 = arith.constant dense<0.000000e+00> : vector<8x512xf32>
    %44 = tpu.matmul %35, %40, %cst_18 {dimension_numbers = #tpu.dot_dimension_numbers<[1], [0], [0], [1], [0, 0, 1, 1], [], []>} : vector<8x128xf32>, vector<128x512xf32>, vector<8x512xf32> -> vector<8x512xf32>
    %45 = arith.addf %43, %44 : vector<8x512xf32>
    %46 = vector.extract_strided_slice %45 {offsets = [0, 0], sizes = [8, 128], strides = [1, 1]} : vector<8x512xf32> to vector<8x128xf32>
    %47 = arith.negf %46 : vector<8x128xf32>
    %48 = math.exp %47 : vector<8x128xf32>
    %cst_19 = arith.constant 1.000000e+00 : f32
    %49 = vector.broadcast %cst_19 : f32 to vector<8x128xf32>
    %50 = arith.addf %49, %48 : vector<8x128xf32>
    %51 = arith.divf %49, %50 : vector<8x128xf32>
    %52 = vector.extract_strided_slice %45 {offsets = [0, 128], sizes = [8, 128], strides = [1, 1]} : vector<8x512xf32> to vector<8x128xf32>
    %53 = arith.negf %52 : vector<8x128xf32>
    %54 = math.exp %53 : vector<8x128xf32>
    %cst_20 = arith.constant 1.000000e+00 : f32
    %55 = vector.broadcast %cst_20 : f32 to vector<8x128xf32>
    %56 = arith.addf %55, %54 : vector<8x128xf32>
    %57 = arith.divf %55, %56 : vector<8x128xf32>
    %58 = vector.extract_strided_slice %45 {offsets = [0, 256], sizes = [8, 128], strides = [1, 1]} : vector<8x512xf32> to vector<8x128xf32>
    %59 = math.tanh %58 : vector<8x128xf32>
    %60 = vector.extract_strided_slice %45 {offsets = [0, 384], sizes = [8, 128], strides = [1, 1]} : vector<8x512xf32> to vector<8x128xf32>
    %61 = arith.negf %60 : vector<8x128xf32>
    %62 = math.exp %61 : vector<8x128xf32>
    %cst_21 = arith.constant 1.000000e+00 : f32
    %63 = vector.broadcast %cst_21 : f32 to vector<8x128xf32>
    %64 = arith.addf %63, %62 : vector<8x128xf32>
    %65 = arith.divf %63, %64 : vector<8x128xf32>
    %66 = arith.mulf %57, %33 : vector<8x128xf32>
    %67 = arith.mulf %51, %59 : vector<8x128xf32>
    %68 = arith.addf %66, %67 : vector<8x128xf32>
    %69 = math.tanh %68 : vector<8x128xf32>
    %70 = arith.mulf %65, %69 : vector<8x128xf32>
    %71 = arith.index_cast %c1_i32 : i32 to index
    %c0_22 = arith.constant 0 : index
    %c0_23 = arith.constant 0 : index
    %72 = vector.load %arg3[%71, %c0_22, %c0_23] : memref<8x8x128xf32, #tpu.memory_space<vmem>>, vector<1x8x128xf32>
    %73 = vector.shape_cast %72 : vector<1x8x128xf32> to vector<8x128xf32>
    %74 = vector.shape_cast %70 : vector<8x128xf32> to vector<1x8x128xf32>
    tpu.vector_store %arg3[%71, %c0_22, %c0_23], %74 {strides = array<i32>} : memref<8x8x128xf32, #tpu.memory_space<vmem>>, vector<1x8x128xf32>,
    %c2_i32 = arith.constant 2 : i32
    %c0_24 = arith.constant 0 : index
    %c0_25 = arith.constant 0 : index
    %75 = vector.load %arg2[%c0_24, %c0_25] : memref<128x512xf32, #tpu.memory_space<vmem>>, vector<128x512xf32>
    %76 = arith.index_cast %c2_i32 : i32 to index
    %c0_26 = arith.constant 0 : index
    %c0_27 = arith.constant 0 : index
    %77 = vector.load %arg1[%76, %c0_26, %c0_27] : memref<8x8x512xf32, #tpu.memory_space<vmem>>, vector<1x8x512xf32>
    %78 = vector.shape_cast %77 : vector<1x8x512xf32> to vector<8x512xf32>
    %cst_28 = arith.constant dense<0.000000e+00> : vector<8x512xf32>
    %79 = tpu.matmul %70, %75, %cst_28 {dimension_numbers = #tpu.dot_dimension_numbers<[1], [0], [0], [1], [0, 0, 1, 1], [], []>} : vector<8x128xf32>, vector<128x512xf32>, vector<8x512xf32> -> vector<8x512xf32>
    %80 = arith.addf %78, %79 : vector<8x512xf32>
    %81 = vector.extract_strided_slice %80 {offsets = [0, 0], sizes = [8, 128], strides = [1, 1]} : vector<8x512xf32> to vector<8x128xf32>
    %82 = arith.negf %81 : vector<8x128xf32>
    %83 = math.exp %82 : vector<8x128xf32>
    %cst_29 = arith.constant 1.000000e+00 : f32
    %84 = vector.broadcast %cst_29 : f32 to vector<8x128xf32>
    %85 = arith.addf %84, %83 : vector<8x128xf32>
    %86 = arith.divf %84, %85 : vector<8x128xf32>
    %87 = vector.extract_strided_slice %80 {offsets = [0, 128], sizes = [8, 128], strides = [1, 1]} : vector<8x512xf32> to vector<8x128xf32>
    %88 = arith.negf %87 : vector<8x128xf32>
    %89 = math.exp %88 : vector<8x128xf32>
    %cst_30 = arith.constant 1.000000e+00 : f32
    %90 = vector.broadcast %cst_30 : f32 to vector<8x128xf32>
    %91 = arith.addf %90, %89 : vector<8x128xf32>
    %92 = arith.divf %90, %91 : vector<8x128xf32>
    %93 = vector.extract_strided_slice %80 {offsets = [0, 256], sizes = [8, 128], strides = [1, 1]} : vector<8x512xf32> to vector<8x128xf32>
    %94 = math.tanh %93 : vector<8x128xf32>
    %95 = vector.extract_strided_slice %80 {offsets = [0, 384], sizes = [8, 128], strides = [1, 1]} : vector<8x512xf32> to vector<8x128xf32>
    %96 = arith.negf %95 : vector<8x128xf32>
    %97 = math.exp %96 : vector<8x128xf32>
    %cst_31 = arith.constant 1.000000e+00 : f32
    %98 = vector.broadcast %cst_31 : f32 to vector<8x128xf32>
    %99 = arith.addf %98, %97 : vector<8x128xf32>
    %100 = arith.divf %98, %99 : vector<8x128xf32>
    %101 = arith.mulf %92, %68 : vector<8x128xf32>
    %102 = arith.mulf %86, %94 : vector<8x128xf32>
    %103 = arith.addf %101, %102 : vector<8x128xf32>
    %104 = math.tanh %103 : vector<8x128xf32>
    %105 = arith.mulf %100, %104 : vector<8x128xf32>
    %106 = arith.index_cast %c2_i32 : i32 to index
    %c0_32 = arith.constant 0 : index
    %c0_33 = arith.constant 0 : index
    %107 = vector.load %arg3[%106, %c0_32, %c0_33] : memref<8x8x128xf32, #tpu.memory_space<vmem>>, vector<1x8x128xf32>
    %108 = vector.shape_cast %107 : vector<1x8x128xf32> to vector<8x128xf32>
    %109 = vector.shape_cast %105 : vector<8x128xf32> to vector<1x8x128xf32>
    tpu.vector_store %arg3[%106, %c0_32, %c0_33], %109 {strides = array<i32>} : memref<8x8x128xf32, #tpu.memory_space<vmem>>, vector<1x8x128xf32>,
    %c3_i32 = arith.constant 3 : i32
    %c0_34 = arith.constant 0 : index
    %c0_35 = arith.constant 0 : index
    %110 = vector.load %arg2[%c0_34, %c0_35] : memref<128x512xf32, #tpu.memory_space<vmem>>, vector<128x512xf32>
    %111 = arith.index_cast %c3_i32 : i32 to index
    %c0_36 = arith.constant 0 : index
    %c0_37 = arith.constant 0 : index
    %112 = vector.load %arg1[%111, %c0_36, %c0_37] : memref<8x8x512xf32, #tpu.memory_space<vmem>>, vector<1x8x512xf32>
    %113 = vector.shape_cast %112 : vector<1x8x512xf32> to vector<8x512xf32>
    %cst_38 = arith.constant dense<0.000000e+00> : vector<8x512xf32>
    %114 = tpu.matmul %105, %110, %cst_38 {dimension_numbers = #tpu.dot_dimension_numbers<[1], [0], [0], [1], [0, 0, 1, 1], [], []>} : vector<8x128xf32>, vector<128x512xf32>, vector<8x512xf32> -> vector<8x512xf32>
    %115 = arith.addf %113, %114 : vector<8x512xf32>
    %116 = vector.extract_strided_slice %115 {offsets = [0, 0], sizes = [8, 128], strides = [1, 1]} : vector<8x512xf32> to vector<8x128xf32>
    %117 = arith.negf %116 : vector<8x128xf32>
    %118 = math.exp %117 : vector<8x128xf32>
    %cst_39 = arith.constant 1.000000e+00 : f32
    %119 = vector.broadcast %cst_39 : f32 to vector<8x128xf32>
    %120 = arith.addf %119, %118 : vector<8x128xf32>
    %121 = arith.divf %119, %120 : vector<8x128xf32>
    %122 = vector.extract_strided_slice %115 {offsets = [0, 128], sizes = [8, 128], strides = [1, 1]} : vector<8x512xf32> to vector<8x128xf32>
    %123 = arith.negf %122 : vector<8x128xf32>
    %124 = math.exp %123 : vector<8x128xf32>
    %cst_40 = arith.constant 1.000000e+00 : f32
    %125 = vector.broadcast %cst_40 : f32 to vector<8x128xf32>
    %126 = arith.addf %125, %124 : vector<8x128xf32>
    %127 = arith.divf %125, %126 : vector<8x128xf32>
    %128 = vector.extract_strided_slice %115 {offsets = [0, 256], sizes = [8, 128], strides = [1, 1]} : vector<8x512xf32> to vector<8x128xf32>
    %129 = math.tanh %128 : vector<8x128xf32>
    %130 = vector.extract_strided_slice %115 {offsets = [0, 384], sizes = [8, 128], strides = [1, 1]} : vector<8x512xf32> to vector<8x128xf32>
    %131 = arith.negf %130 : vector<8x128xf32>
    %132 = math.exp %131 : vector<8x128xf32>
    %cst_41 = arith.constant 1.000000e+00 : f32
    %133 = vector.broadcast %cst_41 : f32 to vector<8x128xf32>
    %134 = arith.addf %133, %132 : vector<8x128xf32>
    %135 = arith.divf %133, %134 : vector<8x128xf32>
    %136 = arith.mulf %127, %103 : vector<8x128xf32>
    %137 = arith.mulf %121, %129 : vector<8x128xf32>
    %138 = arith.addf %136, %137 : vector<8x128xf32>
    %139 = math.tanh %138 : vector<8x128xf32>
    %140 = arith.mulf %135, %139 : vector<8x128xf32>
    %141 = arith.index_cast %c3_i32 : i32 to index
    %c0_42 = arith.constant 0 : index
    %c0_43 = arith.constant 0 : index
    %142 = vector.load %arg3[%141, %c0_42, %c0_43] : memref<8x8x128xf32, #tpu.memory_space<vmem>>, vector<1x8x128xf32>
    %143 = vector.shape_cast %142 : vector<1x8x128xf32> to vector<8x128xf32>
    %144 = vector.shape_cast %140 : vector<8x128xf32> to vector<1x8x128xf32>
    tpu.vector_store %arg3[%141, %c0_42, %c0_43], %144 {strides = array<i32>} : memref<8x8x128xf32, #tpu.memory_space<vmem>>, vector<1x8x128xf32>,
    %c4_i32 = arith.constant 4 : i32
    %c0_44 = arith.constant 0 : index
    %c0_45 = arith.constant 0 : index
    %145 = vector.load %arg2[%c0_44, %c0_45] : memref<128x512xf32, #tpu.memory_space<vmem>>, vector<128x512xf32>
    %146 = arith.index_cast %c4_i32 : i32 to index
    %c0_46 = arith.constant 0 : index
    %c0_47 = arith.constant 0 : index
    %147 = vector.load %arg1[%146, %c0_46, %c0_47] : memref<8x8x512xf32, #tpu.memory_space<vmem>>, vector<1x8x512xf32>
    %148 = vector.shape_cast %147 : vector<1x8x512xf32> to vector<8x512xf32>
    %cst_48 = arith.constant dense<0.000000e+00> : vector<8x512xf32>
    %149 = tpu.matmul %140, %145, %cst_48 {dimension_numbers = #tpu.dot_dimension_numbers<[1], [0], [0], [1], [0, 0, 1, 1], [], []>} : vector<8x128xf32>, vector<128x512xf32>, vector<8x512xf32> -> vector<8x512xf32>
    %150 = arith.addf %148, %149 : vector<8x512xf32>
    %151 = vector.extract_strided_slice %150 {offsets = [0, 0], sizes = [8, 128], strides = [1, 1]} : vector<8x512xf32> to vector<8x128xf32>
    %152 = arith.negf %151 : vector<8x128xf32>
    %153 = math.exp %152 : vector<8x128xf32>
    %cst_49 = arith.constant 1.000000e+00 : f32
    %154 = vector.broadcast %cst_49 : f32 to vector<8x128xf32>
    %155 = arith.addf %154, %153 : vector<8x128xf32>
    %156 = arith.divf %154, %155 : vector<8x128xf32>
    %157 = vector.extract_strided_slice %150 {offsets = [0, 128], sizes = [8, 128], strides = [1, 1]} : vector<8x512xf32> to vector<8x128xf32>
    %158 = arith.negf %157 : vector<8x128xf32>
    %159 = math.exp %158 : vector<8x128xf32>
    %cst_50 = arith.constant 1.000000e+00 : f32
    %160 = vector.broadcast %cst_50 : f32 to vector<8x128xf32>
    %161 = arith.addf %160, %159 : vector<8x128xf32>
    %162 = arith.divf %160, %161 : vector<8x128xf32>
    %163 = vector.extract_strided_slice %150 {offsets = [0, 256], sizes = [8, 128], strides = [1, 1]} : vector<8x512xf32> to vector<8x128xf32>
    %164 = math.tanh %163 : vector<8x128xf32>
    %165 = vector.extract_strided_slice %150 {offsets = [0, 384], sizes = [8, 128], strides = [1, 1]} : vector<8x512xf32> to vector<8x128xf32>
    %166 = arith.negf %165 : vector<8x128xf32>
    %167 = math.exp %166 : vector<8x128xf32>
    %cst_51 = arith.constant 1.000000e+00 : f32
    %168 = vector.broadcast %cst_51 : f32 to vector<8x128xf32>
    %169 = arith.addf %168, %167 : vector<8x128xf32>
    %170 = arith.divf %168, %169 : vector<8x128xf32>
    %171 = arith.mulf %162, %138 : vector<8x128xf32>
    %172 = arith.mulf %156, %164 : vector<8x128xf32>
    %173 = arith.addf %171, %172 : vector<8x128xf32>
    %174 = math.tanh %173 : vector<8x128xf32>
    %175 = arith.mulf %170, %174 : vector<8x128xf32>
    %176 = arith.index_cast %c4_i32 : i32 to index
    %c0_52 = arith.constant 0 : index
    %c0_53 = arith.constant 0 : index
    %177 = vector.load %arg3[%176, %c0_52, %c0_53] : memref<8x8x128xf32, #tpu.memory_space<vmem>>, vector<1x8x128xf32>
    %178 = vector.shape_cast %177 : vector<1x8x128xf32> to vector<8x128xf32>
    %179 = vector.shape_cast %175 : vector<8x128xf32> to vector<1x8x128xf32>
    tpu.vector_store %arg3[%176, %c0_52, %c0_53], %179 {strides = array<i32>} : memref<8x8x128xf32, #tpu.memory_space<vmem>>, vector<1x8x128xf32>,
    %c5_i32 = arith.constant 5 : i32
    %c0_54 = arith.constant 0 : index
    %c0_55 = arith.constant 0 : index
    %180 = vector.load %arg2[%c0_54, %c0_55] : memref<128x512xf32, #tpu.memory_space<vmem>>, vector<128x512xf32>
    %181 = arith.index_cast %c5_i32 : i32 to index
    %c0_56 = arith.constant 0 : index
    %c0_57 = arith.constant 0 : index
    %182 = vector.load %arg1[%181, %c0_56, %c0_57] : memref<8x8x512xf32, #tpu.memory_space<vmem>>, vector<1x8x512xf32>
    %183 = vector.shape_cast %182 : vector<1x8x512xf32> to vector<8x512xf32>
    %cst_58 = arith.constant dense<0.000000e+00> : vector<8x512xf32>
    %184 = tpu.matmul %175, %180, %cst_58 {dimension_numbers = #tpu.dot_dimension_numbers<[1], [0], [0], [1], [0, 0, 1, 1], [], []>} : vector<8x128xf32>, vector<128x512xf32>, vector<8x512xf32> -> vector<8x512xf32>
    %185 = arith.addf %183, %184 : vector<8x512xf32>
    %186 = vector.extract_strided_slice %185 {offsets = [0, 0], sizes = [8, 128], strides = [1, 1]} : vector<8x512xf32> to vector<8x128xf32>
    %187 = arith.negf %186 : vector<8x128xf32>
    %188 = math.exp %187 : vector<8x128xf32>
    %cst_59 = arith.constant 1.000000e+00 : f32
    %189 = vector.broadcast %cst_59 : f32 to vector<8x128xf32>
    %190 = arith.addf %189, %188 : vector<8x128xf32>
    %191 = arith.divf %189, %190 : vector<8x128xf32>
    %192 = vector.extract_strided_slice %185 {offsets = [0, 128], sizes = [8, 128], strides = [1, 1]} : vector<8x512xf32> to vector<8x128xf32>
    %193 = arith.negf %192 : vector<8x128xf32>
    %194 = math.exp %193 : vector<8x128xf32>
    %cst_60 = arith.constant 1.000000e+00 : f32
    %195 = vector.broadcast %cst_60 : f32 to vector<8x128xf32>
    %196 = arith.addf %195, %194 : vector<8x128xf32>
    %197 = arith.divf %195, %196 : vector<8x128xf32>
    %198 = vector.extract_strided_slice %185 {offsets = [0, 256], sizes = [8, 128], strides = [1, 1]} : vector<8x512xf32> to vector<8x128xf32>
    %199 = math.tanh %198 : vector<8x128xf32>
    %200 = vector.extract_strided_slice %185 {offsets = [0, 384], sizes = [8, 128], strides = [1, 1]} : vector<8x512xf32> to vector<8x128xf32>
    %201 = arith.negf %200 : vector<8x128xf32>
    %202 = math.exp %201 : vector<8x128xf32>
    %cst_61 = arith.constant 1.000000e+00 : f32
    %203 = vector.broadcast %cst_61 : f32 to vector<8x128xf32>
    %204 = arith.addf %203, %202 : vector<8x128xf32>
    %205 = arith.divf %203, %204 : vector<8x128xf32>
    %206 = arith.mulf %197, %173 : vector<8x128xf32>
    %207 = arith.mulf %191, %199 : vector<8x128xf32>
    %208 = arith.addf %206, %207 : vector<8x128xf32>
    %209 = math.tanh %208 : vector<8x128xf32>
    %210 = arith.mulf %205, %209 : vector<8x128xf32>
    %211 = arith.index_cast %c5_i32 : i32 to index
    %c0_62 = arith.constant 0 : index
    %c0_63 = arith.constant 0 : index
    %212 = vector.load %arg3[%211, %c0_62, %c0_63] : memref<8x8x128xf32, #tpu.memory_space<vmem>>, vector<1x8x128xf32>
    %213 = vector.shape_cast %212 : vector<1x8x128xf32> to vector<8x128xf32>
    %214 = vector.shape_cast %210 : vector<8x128xf32> to vector<1x8x128xf32>
    tpu.vector_store %arg3[%211, %c0_62, %c0_63], %214 {strides = array<i32>} : memref<8x8x128xf32, #tpu.memory_space<vmem>>, vector<1x8x128xf32>,
    %c6_i32 = arith.constant 6 : i32
    %c0_64 = arith.constant 0 : index
    %c0_65 = arith.constant 0 : index
    %215 = vector.load %arg2[%c0_64, %c0_65] : memref<128x512xf32, #tpu.memory_space<vmem>>, vector<128x512xf32>
    %216 = arith.index_cast %c6_i32 : i32 to index
    %c0_66 = arith.constant 0 : index
    %c0_67 = arith.constant 0 : index
    %217 = vector.load %arg1[%216, %c0_66, %c0_67] : memref<8x8x512xf32, #tpu.memory_space<vmem>>, vector<1x8x512xf32>
    %218 = vector.shape_cast %217 : vector<1x8x512xf32> to vector<8x512xf32>
    %cst_68 = arith.constant dense<0.000000e+00> : vector<8x512xf32>
    %219 = tpu.matmul %210, %215, %cst_68 {dimension_numbers = #tpu.dot_dimension_numbers<[1], [0], [0], [1], [0, 0, 1, 1], [], []>} : vector<8x128xf32>, vector<128x512xf32>, vector<8x512xf32> -> vector<8x512xf32>
    %220 = arith.addf %218, %219 : vector<8x512xf32>
    %221 = vector.extract_strided_slice %220 {offsets = [0, 0], sizes = [8, 128], strides = [1, 1]} : vector<8x512xf32> to vector<8x128xf32>
    %222 = arith.negf %221 : vector<8x128xf32>
    %223 = math.exp %222 : vector<8x128xf32>
    %cst_69 = arith.constant 1.000000e+00 : f32
    %224 = vector.broadcast %cst_69 : f32 to vector<8x128xf32>
    %225 = arith.addf %224, %223 : vector<8x128xf32>
    %226 = arith.divf %224, %225 : vector<8x128xf32>
    %227 = vector.extract_strided_slice %220 {offsets = [0, 128], sizes = [8, 128], strides = [1, 1]} : vector<8x512xf32> to vector<8x128xf32>
    %228 = arith.negf %227 : vector<8x128xf32>
    %229 = math.exp %228 : vector<8x128xf32>
    %cst_70 = arith.constant 1.000000e+00 : f32
    %230 = vector.broadcast %cst_70 : f32 to vector<8x128xf32>
    %231 = arith.addf %230, %229 : vector<8x128xf32>
    %232 = arith.divf %230, %231 : vector<8x128xf32>
    %233 = vector.extract_strided_slice %220 {offsets = [0, 256], sizes = [8, 128], strides = [1, 1]} : vector<8x512xf32> to vector<8x128xf32>
    %234 = math.tanh %233 : vector<8x128xf32>
    %235 = vector.extract_strided_slice %220 {offsets = [0, 384], sizes = [8, 128], strides = [1, 1]} : vector<8x512xf32> to vector<8x128xf32>
    %236 = arith.negf %235 : vector<8x128xf32>
    %237 = math.exp %236 : vector<8x128xf32>
    %cst_71 = arith.constant 1.000000e+00 : f32
    %238 = vector.broadcast %cst_71 : f32 to vector<8x128xf32>
    %239 = arith.addf %238, %237 : vector<8x128xf32>
    %240 = arith.divf %238, %239 : vector<8x128xf32>
    %241 = arith.mulf %232, %208 : vector<8x128xf32>
    %242 = arith.mulf %226, %234 : vector<8x128xf32>
    %243 = arith.addf %241, %242 : vector<8x128xf32>
    %244 = math.tanh %243 : vector<8x128xf32>
    %245 = arith.mulf %240, %244 : vector<8x128xf32>
    %246 = arith.index_cast %c6_i32 : i32 to index
    %c0_72 = arith.constant 0 : index
    %c0_73 = arith.constant 0 : index
    %247 = vector.load %arg3[%246, %c0_72, %c0_73] : memref<8x8x128xf32, #tpu.memory_space<vmem>>, vector<1x8x128xf32>
    %248 = vector.shape_cast %247 : vector<1x8x128xf32> to vector<8x128xf32>
    %249 = vector.shape_cast %245 : vector<8x128xf32> to vector<1x8x128xf32>
    tpu.vector_store %arg3[%246, %c0_72, %c0_73], %249 {strides = array<i32>} : memref<8x8x128xf32, #tpu.memory_space<vmem>>, vector<1x8x128xf32>,
    %c7_i32 = arith.constant 7 : i32
    %c0_74 = arith.constant 0 : index
    %c0_75 = arith.constant 0 : index
    %250 = vector.load %arg2[%c0_74, %c0_75] : memref<128x512xf32, #tpu.memory_space<vmem>>, vector<128x512xf32>
    %251 = arith.index_cast %c7_i32 : i32 to index
    %c0_76 = arith.constant 0 : index
    %c0_77 = arith.constant 0 : index
    %252 = vector.load %arg1[%251, %c0_76, %c0_77] : memref<8x8x512xf32, #tpu.memory_space<vmem>>, vector<1x8x512xf32>
    %253 = vector.shape_cast %252 : vector<1x8x512xf32> to vector<8x512xf32>
    %cst_78 = arith.constant dense<0.000000e+00> : vector<8x512xf32>
    %254 = tpu.matmul %245, %250, %cst_78 {dimension_numbers = #tpu.dot_dimension_numbers<[1], [0], [0], [1], [0, 0, 1, 1], [], []>} : vector<8x128xf32>, vector<128x512xf32>, vector<8x512xf32> -> vector<8x512xf32>
    %255 = arith.addf %253, %254 : vector<8x512xf32>
    %256 = vector.extract_strided_slice %255 {offsets = [0, 0], sizes = [8, 128], strides = [1, 1]} : vector<8x512xf32> to vector<8x128xf32>
    %257 = arith.negf %256 : vector<8x128xf32>
    %258 = math.exp %257 : vector<8x128xf32>
    %cst_79 = arith.constant 1.000000e+00 : f32
    %259 = vector.broadcast %cst_79 : f32 to vector<8x128xf32>
    %260 = arith.addf %259, %258 : vector<8x128xf32>
    %261 = arith.divf %259, %260 : vector<8x128xf32>
    %262 = vector.extract_strided_slice %255 {offsets = [0, 128], sizes = [8, 128], strides = [1, 1]} : vector<8x512xf32> to vector<8x128xf32>
    %263 = arith.negf %262 : vector<8x128xf32>
    %264 = math.exp %263 : vector<8x128xf32>
    %cst_80 = arith.constant 1.000000e+00 : f32
    %265 = vector.broadcast %cst_80 : f32 to vector<8x128xf32>
    %266 = arith.addf %265, %264 : vector<8x128xf32>
    %267 = arith.divf %265, %266 : vector<8x128xf32>
    %268 = vector.extract_strided_slice %255 {offsets = [0, 256], sizes = [8, 128], strides = [1, 1]} : vector<8x512xf32> to vector<8x128xf32>
    %269 = math.tanh %268 : vector<8x128xf32>
    %270 = vector.extract_strided_slice %255 {offsets = [0, 384], sizes = [8, 128], strides = [1, 1]} : vector<8x512xf32> to vector<8x128xf32>
    %271 = arith.negf %270 : vector<8x128xf32>
    %272 = math.exp %271 : vector<8x128xf32>
    %cst_81 = arith.constant 1.000000e+00 : f32
    %273 = vector.broadcast %cst_81 : f32 to vector<8x128xf32>
    %274 = arith.addf %273, %272 : vector<8x128xf32>
    %275 = arith.divf %273, %274 : vector<8x128xf32>
    %276 = arith.mulf %267, %243 : vector<8x128xf32>
    %277 = arith.mulf %261, %269 : vector<8x128xf32>
    %278 = arith.addf %276, %277 : vector<8x128xf32>
    %279 = math.tanh %278 : vector<8x128xf32>
    %280 = arith.mulf %275, %279 : vector<8x128xf32>
    %281 = arith.index_cast %c7_i32 : i32 to index
    %c0_82 = arith.constant 0 : index
    %c0_83 = arith.constant 0 : index
    %282 = vector.load %arg3[%281, %c0_82, %c0_83] : memref<8x8x128xf32, #tpu.memory_space<vmem>>, vector<1x8x128xf32>
    %283 = vector.shape_cast %282 : vector<1x8x128xf32> to vector<8x128xf32>
    %284 = vector.shape_cast %280 : vector<8x128xf32> to vector<1x8x128xf32>
    tpu.vector_store %arg3[%281, %c0_82, %c0_83], %284 {strides = array<i32>} : memref<8x8x128xf32, #tpu.memory_space<vmem>>, vector<1x8x128xf32>,
    %c8_i32 = arith.constant 8 : i32
    %c0_84 = arith.constant 0 : index
    %c0_85 = arith.constant 0 : index
    %285 = vector.load %arg4[%c0_84, %c0_85] : memref<8x128xf32, #tpu.memory_space<vmem>>, vector<8x128xf32>
    tpu.vector_store %arg4[%c0_84, %c0_85], %280 {strides = array<i32>} : memref<8x128xf32, #tpu.memory_space<vmem>>, vector<8x128xf32>,
    %c0_86 = arith.constant 0 : index
    %c0_87 = arith.constant 0 : index
    %286 = vector.load %arg5[%c0_86, %c0_87] : memref<8x128xf32, #tpu.memory_space<vmem>>, vector<8x128xf32>
    tpu.vector_store %arg5[%c0_86, %c0_87], %278 {strides = array<i32>} : memref<8x128xf32, #tpu.memory_space<vmem>>, vector<8x128xf32>,
    return
  }
  func.func @transform_0(%arg0: i32) -> (i32, i32, i32) {
    %c0_i32 = arith.constant 0 : i32
    %c0_i32_0 = arith.constant 0 : i32
    %c0_i32_1 = arith.constant 0 : i32
    return %arg0, %c0_i32, %c0_i32_0 : i32, i32, i32
  }
  func.func @transform_1(%arg0: i32) -> (i32, i32) {
    %c0_i32 = arith.constant 0 : i32
    %c0_i32_0 = arith.constant 0 : i32
    %c0_i32_1 = arith.constant 0 : i32
    return %c0_i32, %c0_i32_0 : i32, i32
  }
  func.func @transform_2(%arg0: i32) -> (i32, i32, i32) {
    %c0_i32 = arith.constant 0 : i32
    %c0_i32_0 = arith.constant 0 : i32
    %c0_i32_1 = arith.constant 0 : i32
    return %arg0, %c0_i32, %c0_i32_0 : i32, i32, i32
  }
  func.func @transform_3(%arg0: i32) -> (i32, i32) {
    %c0_i32 = arith.constant 0 : i32
    %c0_i32_0 = arith.constant 0 : i32
    %c0_i32_1 = arith.constant 0 : i32
    return %c0_i32, %c0_i32_0 : i32, i32
  }
  func.func @transform_4(%arg0: i32) -> (i32, i32) {
    %c0_i32 = arith.constant 0 : i32
    %c0_i32_0 = arith.constant 0 : i32
    %c0_i32_1 = arith.constant 0 : i32
    return %c0_i32, %c0_i32_0 : i32, i32
  }
}

</mosaic_0001>

<bundles_post_ra>
// kernel: tpu_custom_call.1
= control target key start
LH: loop header
LB: loop body
LE: loop exit
PB: predicated region body
PF: predicated region fallthrough
CT: control target
= control target key end

     0   :  { %10 = vsyncpa [#allocation3], 0  ;;  %s3342_s0 = inlined_call_operand.hbm [shape: f32[8,8,512], index: 0, kind: input, shape index: {}]   ;;  %s3343_s1 = inlined_call_operand.hbm [shape: f32[128,512], index: 1, kind: input, shape index: {}]   ;;  %s3344_s2 = inlined_call_operand.hbm [shape: f32[8,8,128], index: 2, kind: output, shape index: {0}]   ;;  %s3345_s3 = inlined_call_operand.hbm [shape: f32[8,128], index: 3, kind: output, shape index: {1}]   ;;  %s3346_s4 = inlined_call_operand.hbm [shape: f32[8,128], index: 4, kind: output, shape index: {2}]  }
   0x1   :  { %11 = vsyncpa [#allocation6], 0 }
   0x2   :  { %12 = vsyncpa [#allocation4], 0 }
   0x3   :  { %13 = vsyncpa [#allocation9], 0  ;;  %s2817_s15 = smov [#allocation2]   ;;  %s2699_s19 = scalar_lea.hbm %s3342_s0, 4096 }
   0x4   :  { %s19_s16 = sshll.u32 %s2817_s15, 4  ;;  %p2700_p0 = scmp.ne.s32.totalorder %s3342_s0, %s2699_s19  ;;  %s20_s16 = int_to_ptr.vmem [resolvable:$true] %s19_s16 }
   0x5   :  { %p2703_p1 = scmp.lt.u32.totalorder %s2699_s19, %s3342_s0 }
   0x7   :  { %p2705_p2 = pnand %p2703_p1, %p2700_p0 }
   0x9   :  { %2708 = shalt.err (!%p2705_p2)
}
   0xa   :  { %s2709_s24 = scalar_lea.vmem %s20_s16, 4096  ;;  %p2714_p4 = scmp.lt.s32.totalorder %s20_s16, %s20_s16 }
   0xb   :  { %p2710_p3 = scmp.ne.s32.totalorder %s20_s16, %s2709_s24  ;;  %p2715_p5 = scmp.lt.s32.totalorder %s2709_s24, %s2709_s24 }
   0xd   :  { %p2716_p6 = por %p2715_p5, %p2714_p4 }
   0xf   :  { %p2717_p7 = pnand %p2716_p6, %p2710_p3 }
  0x11   :  { %2720 = shalt.err (!%p2717_p7)
}
  0x12   :  { %s2818_s25 = smov 512   ;;  %s2819_s26 = smov 32  }
  0x13   :  { %25 = dma.hbm_to_vmem [thread:$0]  %s3342_s0, 4096, %s20_s16, [#allocation3], %s2818_s25, %s2818_s25, %s2819_s26  }
  0x14   :  { %s2820_s29 = smov [#allocation5]   ;;  %s2721_s7 = scalar_lea.hbm %s3343_s1, 8192 }
  0x15   :  { %s31_s30 = sshll.u32 %s2820_s29, 4  ;;  %p2722_p8 = scmp.ne.s32.totalorder %s3343_s1, %s2721_s7  ;;  %s32_s30 = int_to_ptr.vmem [resolvable:$true] %s31_s30 }
  0x16   :  { %p2725_p9 = scmp.lt.u32.totalorder %s2721_s7, %s3343_s1 }
  0x18   :  { %p2727_p10 = pnand %p2725_p9, %p2722_p8 }
  0x1a   :  { %2730 = shalt.err (!%p2727_p10)
}
  0x1b   :  { %s2731_s12 = scalar_lea.vmem %s32_s30, 8192  ;;  %p2736_p12 = scmp.lt.s32.totalorder %s32_s30, %s32_s30 }
  0x1c   :  { %p2732_p11 = scmp.ne.s32.totalorder %s32_s30, %s2731_s12  ;;  %p2737_p13 = scmp.lt.s32.totalorder %s2731_s12, %s2731_s12 }
  0x1e   :  { %p2738_p0 = por %p2737_p13, %p2736_p12 }
  0x20   :  { %p2739_p1 = pnand %p2738_p0, %p2732_p11 }
  0x22   :  { %2742 = shalt.err (!%p2739_p1)
}
  0x23   :  { %37 = dma.hbm_to_vmem [thread:$0]  %s3343_s1, 8192, %s32_s30, [#allocation6], %s2818_s25, %s2818_s25, %s2819_s26  }
  0x24   :  { %2809 = dma.done.wait [#allocation3], 4096  }
  0x25   :  { %2810 = vsyncadd [#allocation3], 4294963200 }
  0x26   :  { %2811 = dma.done.wait [#allocation6], 8192  }
  0x27   :  { %2812 = vsyncadd [#allocation6], 4294959104  ;;  %v2821_v0 = vmov 0.0   ;;  %v53_v1 = vld [vmem:[#allocation5 + $0x8] sm:$0xff]  ;;  %v52_v3 = vld [vmem:[#allocation5] sm:$0xff]  ;;  %s2822_s1 = smov [#allocation8]  }
  0x28   :  { %184 = vmatprep.mubr.f32.mxu0 %v2821_v0  ;;  %255 = vmatprep.mubr.f32.mxu1 %v2821_v0  ;;  %v57_v2 = vld [vmem:[#allocation5 + $0x28] sm:$0xff]  ;;  %v56_v5 = vld [vmem:[#allocation5 + $0x20] sm:$0xff]  ;;  %v55_v19 = vld [vmem:[#allocation5 + $0x18] sm:$0xff]  ;;  %s1998_s14 = sshll.u32 %s2822_s1, 4  ;;  %s2823_s15 = smov [#allocation7]   ;;  %s1999_s14 = int_to_ptr.vmem [resolvable:$true] %s1998_s14 }
  0x29   :  { %v2878_v4 = vpack.c.bf16 %v57_v2, %v53_v1  ;;  %v61_v6 = vld [vmem:[#allocation5 + $0x48] sm:$0xff]  ;;  %v2880_v8 = vpack.c.bf16 %v56_v5, %v52_v3  ;;  %v60_v10 = vld [vmem:[#allocation5 + $0x40] sm:$0xff]  ;;  %v59_v20 = vld [vmem:[#allocation5 + $0x38] sm:$0xff]  ;;  %s1985_s16 = sshll.u32 %s2823_s15, 4  ;;  %s2824_s17 = smov [#allocation10]   ;;  %s3292_s16 = int_to_ptr.vmem [resolvable:$true] %s1985_s16 }
  0x2a   :  { %v65_v7 = vld [vmem:[#allocation5 + $0x68] sm:$0xff]  ;;  %v64_v11 = vld [vmem:[#allocation5 + $0x60] sm:$0xff]  ;;  %v2891_v22 = vpack.c.bf16 %v59_v20, %v55_v19  ;;  %v54_v23 = vld [vmem:[#allocation5 + $0x10] sm:$0xff]  ;;  %s2008_s18 = sshll.u32 %s2824_s17, 4  ;;  %s2743_s19 = scalar_lea.vmem %s1999_s14, 128  ;;  %s3294_s18 = int_to_ptr.vmem [resolvable:$true] %s2008_s18 }
  0x2b   :  { %v2882_v9 = vpack.c.bf16 %v65_v7, %v61_v6  ;;  %v69_v12 = vld [vmem:[#allocation5 + $0x88] sm:$0xff]  ;;  %2050 = vmatprep.subr.bf16.mxu0 %v2878_v4  ;;  %v2886_v14 = vpack.c.bf16 %v64_v11, %v60_v10  ;;  %v68_v15 = vld [vmem:[#allocation5 + $0x80] sm:$0xff]  ;;  %v58_v24 = vld [vmem:[#allocation5 + $0x30] sm:$0xff]  ;;  %p2744_p2 = scmp.ne.s32.totalorder %s1999_s14, %s2743_s19  ;;  %p2748_p3 = scmp.lt.s32.totalorder %s1999_s14, %s1999_s14 }
  0x2c   :  { %v73_v13 = vld [vmem:[#allocation5 + $0xa8] sm:$0xff]  ;;  %2052 = vmatpush1.bf16.msra.mxu0 %v2880_v8  ;;  %v72_v16 = vld [vmem:[#allocation5 + $0xa0] sm:$0xff]  ;;  %v2893_v25 = vpack.c.bf16 %v58_v24, %v54_v23  ;;  %2082 = vmatprep.subr.bf16.mxu1 %v2891_v22  ;;  %v63_v27 = vld [vmem:[#allocation5 + $0x58] sm:$0xff]  ;;  %p2749_p4 = scmp.lt.s32.totalorder %s2743_s19, %s2743_s19 }
  0x2d   :  { %2054 = vmatprep.subr.bf16.mxu0 %v2882_v9  ;;  %v2889_v17 = vpack.c.bf16 %v73_v13, %v69_v12  ;;  %v77_v18 = vld [vmem:[#allocation5 + $0xc8] sm:$0xff]  ;;  %v2896_v26 = vpack.c.bf16 %v72_v16, %v68_v15  ;;  %v67_v28 = vld [vmem:[#allocation5 + $0x78] sm:$0xff]  ;;  %v62_v29 = vld [vmem:[#allocation5 + $0x50] sm:$0xff] }
  0x2e   :  { %v81_v21 = vld [vmem:[#allocation5 + $0xe8] sm:$0xff]  ;;  %v76_v31 = vld [vmem:[#allocation5 + $0xc0] sm:$0xff]  ;;  %2084 = vmatpush1.bf16.msra.mxu1 %v2893_v25  ;;  %v2903_v33 = vpack.c.bf16 %v67_v28, %v63_v27  ;;  %v66_v34 = vld [vmem:[#allocation5 + $0x70] sm:$0xff]  ;;  %p2750_p5 = por %p2749_p4, %p2748_p3 }
  0x2f   :  { %v2900_v30 = vpack.c.bf16 %v81_v21, %v77_v18  ;;  %v80_v32 = vld [vmem:[#allocation5 + $0xe0] sm:$0xff]  ;;  %v85_v35 = vld [vmem:[#allocation5 + $0x108] sm:$0xff]  ;;  %v2905_v37 = vpack.c.bf16 %v66_v34, %v62_v29  ;;  %v71_v38 = vld [vmem:[#allocation5 + $0x98] sm:$0xff] }
  0x30   :  { %2056 = vmatpush1.bf16.msra.mxu0 %v2886_v14  ;;  %v89_v36 = vld [vmem:[#allocation5 + $0x128] sm:$0xff]  ;;  %2086 = vmatprep.subr.bf16.mxu1 %v2903_v33  ;;  %v75_v39 = vld [vmem:[#allocation5 + $0xb8] sm:$0xff]  ;;  %v70_v40 = vld [vmem:[#allocation5 + $0x90] sm:$0xff]  ;;  %v2909_v42 = vpack.c.bf16 %v80_v32, %v76_v31  ;;  %p2751_p6 = pnand %p2750_p5, %p2744_p2 }
  0x31   :  { %2058 = vmatprep.subr.bf16.mxu0 %v2889_v17  ;;  %v74_v41 = vld [vmem:[#allocation5 + $0xb0] sm:$0xff]  ;;  %v84_v43 = vld [vmem:[#allocation5 + $0x100] sm:$0xff]  ;;  %v2911_v45 = vpack.c.bf16 %v75_v39, %v71_v38  ;;  %v2914_v46 = vpack.c.bf16 %v89_v36, %v85_v35  ;;  %v93_v47 = vld [vmem:[#allocation5 + $0x148] sm:$0xff] }
  0x32   :  { %v88_v44 = vld [vmem:[#allocation5 + $0x120] sm:$0xff]  ;;  %2088 = vmatpush1.bf16.msra.mxu1 %v2905_v37  ;;  %v2917_v48 = vpack.c.bf16 %v74_v41, %v70_v40  ;;  %v79_v49 = vld [vmem:[#allocation5 + $0xd8] sm:$0xff]  ;;  %v97_v51 = vld [vmem:[#allocation5 + $0x168] sm:$0xff] }
  0x33   :  { %v83_v50 = vld [vmem:[#allocation5 + $0xf8] sm:$0xff]  ;;  %2090 = vmatprep.subr.bf16.mxu1 %v2911_v45  ;;  %v78_v53 = vld [vmem:[#allocation5 + $0xd0] sm:$0xff]  ;;  %v2923_v55 = vpack.c.bf16 %v88_v44, %v84_v43  ;;  %v2926_v58 = vpack.c.bf16 %v97_v51, %v93_v47  ;;  %v92_v59 = vld [vmem:[#allocation5 + $0x140] sm:$0xff] }
  0x34   :  { %2060 = vmatpush1.bf16.msra.mxu0 %v2896_v26  ;;  %v2920_v52 = vpack.c.bf16 %v83_v50, %v79_v49  ;;  %v82_v54 = vld [vmem:[#allocation5 + $0xf0] sm:$0xff]  ;;  %v87_v56 = vld [vmem:[#allocation5 + $0x118] sm:$0xff]  ;;  %v96_v60 = vld [vmem:[#allocation5 + $0x160] sm:$0xff] }
  0x35   :  { %2062 = vmatprep.subr.bf16.mxu0 %v2900_v30  ;;  %v91_v57 = vld [vmem:[#allocation5 + $0x138] sm:$0xff]  ;;  %v101_v61 = vld [vmem:[#allocation5 + $0x188] sm:$0xff]  ;;  %v2929_v62 = vpack.c.bf16 %v82_v54, %v78_v53  ;;  %v86_v2 = vld [vmem:[#allocation5 + $0x110] sm:$0xff]  ;;  %v2935_v7 = vpack.c.bf16 %v96_v60, %v92_v59 }
  0x36   :  { %2092 = vmatpush1.bf16.msra.mxu1 %v2917_v48  ;;  %v105_v63 = vld [vmem:[#allocation5 + $0x1a8] sm:$0xff]  ;;  %v2932_v1 = vpack.c.bf16 %v91_v57, %v87_v56  ;;  %v90_v3 = vld [vmem:[#allocation5 + $0x130] sm:$0xff]  ;;  %v95_v5 = vld [vmem:[#allocation5 + $0x158] sm:$0xff] }
  0x37   :  { %2094 = vmatprep.subr.bf16.mxu1 %v2920_v52  ;;  %v99_v6 = vld [vmem:[#allocation5 + $0x178] sm:$0xff]  ;;  %v2938_v10 = vpack.c.bf16 %v105_v63, %v101_v61  ;;  %v100_v11 = vld [vmem:[#allocation5 + $0x180] sm:$0xff]  ;;  %v109_v13 = vld [vmem:[#allocation5 + $0x1c8] sm:$0xff]  ;;  %v2941_v15 = vpack.c.bf16 %v90_v3, %v86_v2 }
  0x38   :  { %2064 = vmatpush1.bf16.msra.mxu0 %v2909_v42  ;;  %v104_v12 = vld [vmem:[#allocation5 + $0x1a0] sm:$0xff]  ;;  %v113_v16 = vld [vmem:[#allocation5 + $0x1e8] sm:$0xff]  ;;  %v2944_v18 = vpack.c.bf16 %v99_v6, %v95_v5  ;;  %v94_v19 = vld [vmem:[#allocation5 + $0x150] sm:$0xff] }
  0x39   :  { %2066 = vmatprep.subr.bf16.mxu0 %v2914_v46  ;;  %v98_v20 = vld [vmem:[#allocation5 + $0x170] sm:$0xff]  ;;  %v103_v21 = vld [vmem:[#allocation5 + $0x198] sm:$0xff]  ;;  %v2947_v24 = vpack.c.bf16 %v104_v12, %v100_v11  ;;  %v2950_v27 = vpack.c.bf16 %v113_v16, %v109_v13  ;;  %v108_v28 = vld [vmem:[#allocation5 + $0x1c0] sm:$0xff] }
  0x3a   :  { %2096 = vmatpush1.bf16.msra.mxu1 %v2929_v62  ;;  %v107_v23 = vld [vmem:[#allocation5 + $0x1b8] sm:$0xff]  ;;  %v112_v29 = vld [vmem:[#allocation5 + $0x1e0] sm:$0xff]  ;;  %v2953_v31 = vpack.c.bf16 %v98_v20, %v94_v19  ;;  %v102_v34 = vld [vmem:[#allocation5 + $0x190] sm:$0xff] }
  0x3b   :  { %2098 = vmatprep.subr.bf16.mxu1 %v2932_v1  ;;  %v2956_v32 = vpack.c.bf16 %v107_v23, %v103_v21  ;;  %v106_v35 = vld [vmem:[#allocation5 + $0x1b0] sm:$0xff]  ;;  %v111_v36 = vld [vmem:[#allocation5 + $0x1d8] sm:$0xff]  ;;  %v2959_v39 = vpack.c.bf16 %v112_v29, %v108_v28  ;;  %v116_v49 = vld [vmem:[#allocation2] sm:$0xff] }
  0x3c   :  { %2068 = vmatpush1.bf16.msra.mxu0 %v2923_v55  ;;  %v115_v38 = vld [vmem:[#allocation5 + $0x1f8] sm:$0xff]  ;;  %v2963_v40 = vpack.c.bf16 %v106_v35, %v102_v34  ;;  %v110_v43 = vld [vmem:[#allocation5 + $0x1d0] sm:$0xff]  ;;  %v117_v50 = vld [vmem:[#allocation2 + $0x8] sm:$0xff] }
  0x3d   :  { %2070 = vmatprep.subr.bf16.mxu0 %v2926_v58  ;;  %v2966_v41 = vpack.c.bf16 %v115_v38, %v111_v36  ;;  %v114_v44 = vld [vmem:[#allocation5 + $0x1f0] sm:$0xff]  ;;  %v119_v60 = vld [vmem:[#allocation2 + $0x18] sm:$0xff] }
  0x3e   :  { %2100 = vmatpush1.bf16.msra.mxu1 %v2941_v15  ;;  %v2970_v47 = vpack.c.bf16 %v114_v44, %v110_v43  ;;  %v118_v3 = vld [vmem:[#allocation2 + $0x10] sm:$0xff] }
  0x3f   :  { %2102 = vmatprep.subr.bf16.mxu1 %v2944_v18 }
  0x40   :  { %2072 = vmatpush1.bf16.msra.mxu0 %v2935_v7 }
  0x41   :  { %2074 = vmatprep.subr.bf16.mxu0 %v2938_v10 }
  0x42   :  { %2104 = vmatpush1.bf16.msra.mxu1 %v2953_v31 }
  0x43   :  { %2106 = vmatprep.subr.bf16.mxu1 %v2956_v32 }
  0x44   :  { %2076 = vmatpush1.bf16.msra.mxu0 %v2947_v24 }
  0x45   :  { %2078 = vmatprep.subr.bf16.mxu0 %v2950_v27 }
  0x46   :  { %2108 = vmatpush1.bf16.msra.mxu1 %v2963_v40 }
  0x47   :  { %2110 = vmatprep.subr.bf16.mxu1 %v2966_v41 }
  0x48   :  { %2080 = vmatpush1.bf16.msra.mxu0 %v2959_v39 }
  0x49   :  { %2114 = vmatprep.subr.bf16.mxu0 %v2878_v4 }
  0x4a   :  { %2112 = vmatpush1.bf16.msra.mxu1 %v2970_v47 }
  0x4b   :  { %185 = vmatmul.mubr.f32.vlgmr.msra.gmra.mrb[0].mxu0 %v2821_v0  ;;  %2146 = vmatprep.subr.bf16.mxu1 %v2891_v22 }
  0x4c   :  { %2116 = vmatpush1.bf16.msra.mxu0 %v2880_v8  ;;  %424 = vmatprep.mubr.f32.mxu0 %v2821_v0 }
  0x4d   :  { %2118 = vmatprep.subr.bf16.mxu0 %v2882_v9  ;;  %256 = vmatmul.mubr.f32.vlgmr.msra.gmra.mrb[0].mxu1 %v2821_v0 }
  0x4e   :  { %2148 = vmatpush1.bf16.msra.mxu1 %v2893_v25  ;;  %495 = vmatprep.mubr.f32.mxu1 %v2821_v0 }
  0x4f   :  { %2150 = vmatprep.subr.bf16.mxu1 %v2903_v33 }
  0x50   :  { %2120 = vmatpush1.bf16.msra.mxu0 %v2886_v14 }
  0x51   :  { %2122 = vmatprep.subr.bf16.mxu0 %v2889_v17 }
  0x52   :  { %2152 = vmatpush1.bf16.msra.mxu1 %v2905_v37 }
  0x53   :  { %2154 = vmatprep.subr.bf16.mxu1 %v2911_v45 }
  0x54   :  { %2124 = vmatpush1.bf16.msra.mxu0 %v2896_v26 }
  0x55   :  { %2126 = vmatprep.subr.bf16.mxu0 %v2900_v30 }
  0x56   :  { %2156 = vmatpush1.bf16.msra.mxu1 %v2917_v48 }
  0x57   :  { %2158 = vmatprep.subr.bf16.mxu1 %v2920_v52 }
  0x58   :  { %2128 = vmatpush1.bf16.msra.mxu0 %v2909_v42 }
  0x59   :  { %2130 = vmatprep.subr.bf16.mxu0 %v2914_v46 }
  0x5a   :  { %2160 = vmatpush1.bf16.msra.mxu1 %v2929_v62 }
  0x5b   :  { %2162 = vmatprep.subr.bf16.mxu1 %v2932_v1 }
  0x5c   :  { %2132 = vmatpush1.bf16.msra.mxu0 %v2923_v55 }
  0x5d   :  { %2134 = vmatprep.subr.bf16.mxu0 %v2926_v58 }
  0x5e   :  { %2164 = vmatpush1.bf16.msra.mxu1 %v2941_v15 }
  0x5f   :  { %2166 = vmatprep.subr.bf16.mxu1 %v2944_v18 }
  0x60   :  { %2136 = vmatpush1.bf16.msra.mxu0 %v2935_v7 }
  0x61   :  { %2138 = vmatprep.subr.bf16.mxu0 %v2938_v10 }
  0x62   :  { %2168 = vmatpush1.bf16.msra.mxu1 %v2953_v31 }
  0x63   :  { %2170 = vmatprep.subr.bf16.mxu1 %v2956_v32 }
  0x64   :  { %2140 = vmatpush1.bf16.msra.mxu0 %v2947_v24 }
  0x65   :  { %2142 = vmatprep.subr.bf16.mxu0 %v2950_v27 }
  0x66   :  { %2172 = vmatpush1.bf16.msra.mxu1 %v2963_v40 }
  0x67   :  { %2174 = vmatprep.subr.bf16.mxu1 %v2966_v41 }
  0x68   :  { %2144 = vmatpush1.bf16.msra.mxu0 %v2959_v39 }
  0x69   :  { %2178 = vmatprep.subr.bf16.mxu0 %v2878_v4 }
  0x6a   :  { %2176 = vmatpush1.bf16.msra.mxu1 %v2970_v47 }
  0x6b   :  { %2210 = vmatprep.subr.bf16.mxu1 %v2891_v22 }
 0x11e   :  { %v186_v51 = vpop.f32.mrb[0].mxu0 }
 0x11f   :  { %v262_v53 = vadd.f32 %v186_v51, %v116_v49  ;;  %v188_v54 = vpop.f32.mrb[1].mxu0  ;;  %v359_v49 = vld [vmem:[#allocation2 + $0x38] sm:$0xff] }
 0x120   :  { %v263_v56 = vadd.f32 %v188_v54, %v117_v50  ;;  %v257_v61 = vpop.f32.mrb[0].mxu1  ;;  %v358_v50 = vld [vmem:[#allocation2 + $0x30] sm:$0xff] }
 0x121   :  { %v2025_v57 = vmul.f32 -1.442695, %v262_v53  ;;  %v259_v63 = vpop.f32.mrb[1].mxu1  ;;  %v264_v6 = vadd.f32 %v257_v61, %v118_v3 }
 0x122   :  { %v2026_v59 = vmul.f32 -1.442695, %v263_v56  ;;  %v265_v2 = vadd.f32 %v259_v63, %v119_v60 }
 0x123   :  { %2571 = vpow2.f32 %v2025_v57 }
 0x124   :  { %2573 = vpow2.f32 %v2026_v59  ;;  %v2027_v5 = vmul.f32 -1.442695, %v265_v2 }
 0x126   :  { %2575 = vpow2.f32 %v2027_v5 }
 0x127   :  { %2577 = vtanh.f32 %v264_v6 }
 0x12d   :  { %v2572_v11 = vpop.eup %2571 }
 0x12e   :  { %v2574_v12 = vpop.eup %2573  ;;  %v269_v13 = vadd.f32 1.0, %v2572_v11 }
 0x12f   :  { %v275_v16 = vadd.f32 1.0, %v2574_v12 }
 0x130   :  { %2579 = vrcp.f32 %v269_v13  ;;  %v2576_v19 = vpop.eup %2575 }
 0x131   :  { %2581 = vrcp.f32 %v275_v16  ;;  %v2578_v20 = vpop.eup %2577  ;;  %v282_v23 = vadd.f32 1.0, %v2576_v19  ;;  %v821_v16 = vld [vmem:[#allocation5 + $0x180] sm:$0xff] }
 0x132   :  { %v825_v19 = vld [vmem:[#allocation5 + $0x1a0] sm:$0xff] }
 0x133   :  { %2583 = vrcp.f32 %v282_v23  ;;  %v3095_v23 = vpack.c.bf16 %v825_v19, %v821_v16  ;;  %v1022_v16 = vld [vmem:[#allocation5 + $0x40] sm:$0xff] }
 0x134   :  { %v1026_v19 = vld [vmem:[#allocation5 + $0x60] sm:$0xff] }
 0x13a   :  { %v2580_v21 = vpop.eup %2579 }
 0x13b   :  { %v2582_v28 = vpop.eup %2581  ;;  %v286_v29 = vmul.f32 %v2580_v21, %v2578_v20  ;;  %v830_v20 = vld [vmem:[#allocation5 + $0x1c8] sm:$0xff] }
 0x13c   :  { %v285_v34 = vmul.f32 0.0, %v2582_v28  ;;  %v834_v21 = vld [vmem:[#allocation5 + $0x1e8] sm:$0xff] }
 0x13d   :  { %v2584_v36 = vpop.eup %2583  ;;  %v3098_v28 = vpack.c.bf16 %v834_v21, %v830_v20  ;;  %v3127_v21 = vpack.c.bf16 %v1026_v19, %v1022_v16  ;;  %v1076_v16 = vld [vmem:[#allocation5 + $0x1f0] sm:$0xff] }
 0x13e   :  { %v3012_v35 = vadd.f32 %v286_v29, %v285_v34  ;;  %v829_v29 = vld [vmem:[#allocation5 + $0x1c0] sm:$0xff] }
 0x13f   :  { %v833_v34 = vld [vmem:[#allocation5 + $0x1e0] sm:$0xff] }
 0x140   :  { %2585 = vtanh.f32 %v3012_v35 }
 0x14a   :  { %v2586_v38 = vpop.eup %2585 }
 0x14b   :  { %v289_v43 = vmul.f32 %v2586_v38, %v2584_v36  ;;  %v597_v36 = vld [vmem:[#allocation2 + $0x40] sm:$0xff]  ;;  %v598_v38 = vld [vmem:[#allocation2 + $0x48] sm:$0xff] }
 0x14d   :  { %290 = vst [vmem:[#allocation7] sm:$0xff] %v289_v43  ;;  %425 = vmatmul.mubr.f32.vlgmr.msra.gmra.mrb[2].mxu0 %v289_v43  ;;  %496 = vmatmul.mubr.f32.vlgmr.msra.gmra.mrb[2].mxu1 %v289_v43 }
 0x14e   :  { %2180 = vmatpush1.bf16.msra.mxu0 %v2880_v8  ;;  %2212 = vmatpush1.bf16.msra.mxu1 %v2893_v25 }
 0x14f   :  { %2182 = vmatprep.subr.bf16.mxu0 %v2882_v9  ;;  %2214 = vmatprep.subr.bf16.mxu1 %v2903_v33 }
 0x150   :  { %665 = vmatprep.mubr.f32.mxu0 %v2821_v0  ;;  %736 = vmatprep.mubr.f32.mxu1 %v2821_v0 }
 0x152   :  { %2184 = vmatpush1.bf16.msra.mxu0 %v2886_v14  ;;  %2216 = vmatpush1.bf16.msra.mxu1 %v2905_v37 }
 0x153   :  { %2186 = vmatprep.subr.bf16.mxu0 %v2889_v17  ;;  %2218 = vmatprep.subr.bf16.mxu1 %v2911_v45 }
 0x156   :  { %2188 = vmatpush1.bf16.msra.mxu0 %v2896_v26  ;;  %2220 = vmatpush1.bf16.msra.mxu1 %v2917_v48 }
 0x157   :  { %2190 = vmatprep.subr.bf16.mxu0 %v2900_v30  ;;  %2222 = vmatprep.subr.bf16.mxu1 %v2920_v52  ;;  %v356_v30 = vld [vmem:[#allocation2 + $0x20] sm:$0xff] }
 0x15a   :  { %2192 = vmatpush1.bf16.msra.mxu0 %v2909_v42  ;;  %2224 = vmatpush1.bf16.msra.mxu1 %v2929_v62  ;;  %v357_v42 = vld [vmem:[#allocation2 + $0x28] sm:$0xff] }
 0x15b   :  { %2194 = vmatprep.subr.bf16.mxu0 %v2914_v46  ;;  %2226 = vmatprep.subr.bf16.mxu1 %v2932_v1 }
 0x15e   :  { %2196 = vmatpush1.bf16.msra.mxu0 %v2923_v55  ;;  %2228 = vmatpush1.bf16.msra.mxu1 %v2941_v15 }
 0x15f   :  { %2198 = vmatprep.subr.bf16.mxu0 %v2926_v58  ;;  %2230 = vmatprep.subr.bf16.mxu1 %v2944_v18 }
 0x162   :  { %2200 = vmatpush1.bf16.msra.mxu0 %v2935_v7  ;;  %2232 = vmatpush1.bf16.msra.mxu1 %v2953_v31 }
 0x163   :  { %2202 = vmatprep.subr.bf16.mxu0 %v2938_v10  ;;  %2234 = vmatprep.subr.bf16.mxu1 %v2956_v32 }
 0x166   :  { %2204 = vmatpush1.bf16.msra.mxu0 %v2947_v24  ;;  %2236 = vmatpush1.bf16.msra.mxu1 %v2963_v40 }
 0x167   :  { %2206 = vmatprep.subr.bf16.mxu0 %v2950_v27  ;;  %2238 = vmatprep.subr.bf16.mxu1 %v2966_v41 }
 0x16a   :  { %2208 = vmatpush1.bf16.msra.mxu0 %v2959_v39  ;;  %2240 = vmatpush1.bf16.msra.mxu1 %v2970_v47 }
 0x16b   :  { %2242 = vmatprep.subr.bf16.mxu0 %v2878_v4  ;;  %2274 = vmatprep.subr.bf16.mxu1 %v2891_v22 }
 0x220   :  { %v426_v46 = vpop.f32.mrb[2].mxu0  ;;  %v497_v55 = vpop.f32.mrb[2].mxu1 }
 0x221   :  { %v502_v58 = vadd.f32 %v426_v46, %v356_v30  ;;  %v428_v7 = vpop.f32.mrb[3].mxu0  ;;  %v499_v10 = vpop.f32.mrb[3].mxu1  ;;  %v504_v53 = vadd.f32 %v497_v55, %v358_v50 }
 0x222   :  { %v503_v24 = vadd.f32 %v428_v7, %v357_v42  ;;  %v505_v39 = vadd.f32 %v499_v10, %v359_v49 }
 0x223   :  { %v2028_v44 = vmul.f32 -1.442695, %v502_v58 }
 0x224   :  { %v2029_v27 = vmul.f32 -1.442695, %v503_v24  ;;  %v2030_v51 = vmul.f32 -1.442695, %v505_v39  ;;  %v600_v24 = vld [vmem:[#allocation2 + $0x58] sm:$0xff] }
 0x225   :  { %2587 = vpow2.f32 %v2028_v44 }
 0x226   :  { %2589 = vpow2.f32 %v2029_v27  ;;  %v599_v27 = vld [vmem:[#allocation2 + $0x50] sm:$0xff] }
 0x227   :  { %2591 = vpow2.f32 %v2030_v51 }
 0x228   :  { %2593 = vtanh.f32 %v504_v53 }
 0x22f   :  { %v2588_v4 = vpop.eup %2587 }
 0x230   :  { %v2590_v54 = vpop.eup %2589  ;;  %v509_v22 = vadd.f32 1.0, %v2588_v4 }
 0x231   :  { %v515_v56 = vadd.f32 1.0, %v2590_v54  ;;  %v2592_v57 = vpop.eup %2591 }
 0x232   :  { %2595 = vrcp.f32 %v509_v22  ;;  %v2594_v59 = vpop.eup %2593  ;;  %v522_v2 = vadd.f32 1.0, %v2592_v57 }
 0x233   :  { %2597 = vrcp.f32 %v515_v56 }
 0x234   :  { %2599 = vrcp.f32 %v522_v2 }
 0x23c   :  { %v2596_v60 = vpop.eup %2595 }
 0x23d   :  { %v2598_v61 = vpop.eup %2597  ;;  %v526_v63 = vmul.f32 %v2596_v60, %v2594_v59 }
 0x23e   :  { %v525_v3 = vmul.f32 %v2598_v61, %v3012_v35  ;;  %v2600_v6 = vpop.eup %2599  ;;  %v3101_v35 = vpack.c.bf16 %v833_v34, %v829_v29  ;;  %v1024_v29 = vld [vmem:[#allocation5 + $0x50] sm:$0xff] }
 0x23f   :  { %v1028_v34 = vld [vmem:[#allocation5 + $0x70] sm:$0xff] }
 0x240   :  { %v3050_v5 = vadd.f32 %v526_v63, %v525_v3 }
 0x242   :  { %2601 = vtanh.f32 %v3050_v5 }
 0x24c   :  { %v2602_v11 = vpop.eup %2601 }
 0x24d   :  { %v529_v12 = vmul.f32 %v2602_v11, %v2600_v6  ;;  %v1015_v11 = vld [vmem:[#allocation5 + $0x8] sm:$0xff] }
 0x24f   :  { %531 = vst [vmem:[#allocation7 + $0x8] sm:$0xff] %v529_v12  ;;  %666 = vmatmul.mubr.f32.vlgmr.msra.gmra.mrb[4].mxu0 %v529_v12  ;;  %737 = vmatmul.mubr.f32.vlgmr.msra.gmra.mrb[4].mxu1 %v529_v12  ;;  %v1019_v12 = vld [vmem:[#allocation5 + $0x28] sm:$0xff] }
 0x250   :  { %2244 = vmatpush1.bf16.msra.mxu0 %v2880_v8  ;;  %2276 = vmatpush1.bf16.msra.mxu1 %v2893_v25  ;;  %v798_v8 = vld [vmem:[#allocation5 + $0xc8] sm:$0xff]  ;;  %v801_v25 = vld [vmem:[#allocation5 + $0xe0] sm:$0xff] }
 0x251   :  { %2246 = vmatprep.subr.bf16.mxu0 %v2882_v9  ;;  %2278 = vmatprep.subr.bf16.mxu1 %v2903_v33  ;;  %v802_v9 = vld [vmem:[#allocation5 + $0xe8] sm:$0xff] }
 0x252   :  { %906 = vmatprep.mubr.f32.mxu0 %v2821_v0  ;;  %977 = vmatprep.mubr.f32.mxu1 %v2821_v0  ;;  %v806_v33 = vld [vmem:[#allocation5 + $0x108] sm:$0xff] }
 0x254   :  { %2248 = vmatpush1.bf16.msra.mxu0 %v2886_v14  ;;  %2280 = vmatpush1.bf16.msra.mxu1 %v2905_v37  ;;  %v3075_v14 = vpack.c.bf16 %v802_v9, %v798_v8  ;;  %v810_v37 = vld [vmem:[#allocation5 + $0x128] sm:$0xff]  ;;  %v1017_v8 = vld [vmem:[#allocation5 + $0x18] sm:$0xff]  ;;  %v3111_v9 = vpack.c.bf16 %v1019_v12, %v1015_v11  ;;  %v1060_v11 = vld [vmem:[#allocation5 + $0x170] sm:$0xff] }
 0x255   :  { %2250 = vmatprep.subr.bf16.mxu0 %v2889_v17  ;;  %2282 = vmatprep.subr.bf16.mxu1 %v2911_v45  ;;  %v797_v17 = vld [vmem:[#allocation5 + $0xc0] sm:$0xff]  ;;  %v3081_v45 = vpack.c.bf16 %v810_v37, %v806_v33  ;;  %v1065_v12 = vld [vmem:[#allocation5 + $0x198] sm:$0xff] }
 0x258   :  { %2252 = vmatpush1.bf16.msra.mxu0 %v2896_v26  ;;  %2284 = vmatpush1.bf16.msra.mxu1 %v2917_v48  ;;  %v3077_v26 = vpack.c.bf16 %v801_v25, %v797_v17  ;;  %v805_v48 = vld [vmem:[#allocation5 + $0x100] sm:$0xff] }
 0x259   :  { %2286 = vmatprep.subr.bf16.mxu1 %v2920_v52  ;;  %2254 = vmatprep.subr.bf16.mxu0 %v3075_v14  ;;  %v809_v52 = vld [vmem:[#allocation5 + $0x120] sm:$0xff] }
 0x25a   :  { %v1014_v17 = vld [vmem:[#allocation5] sm:$0xff] }
 0x25b   :  { %v1018_v25 = vld [vmem:[#allocation5 + $0x20] sm:$0xff] }
 0x25c   :  { %2288 = vmatpush1.bf16.msra.mxu1 %v2929_v62  ;;  %2256 = vmatpush1.bf16.msra.mxu0 %v3077_v26  ;;  %v3083_v62 = vpack.c.bf16 %v809_v52, %v805_v48  ;;  %v3115_v37 = vpack.c.bf16 %v1018_v25, %v1014_v17  ;;  %v1016_v48 = vld [vmem:[#allocation5 + $0x10] sm:$0xff] }
 0x25d   :  { %2290 = vmatprep.subr.bf16.mxu1 %v2932_v1  ;;  %2258 = vmatprep.subr.bf16.mxu0 %v3081_v45  ;;  %v814_v1 = vld [vmem:[#allocation5 + $0x148] sm:$0xff]  ;;  %v1020_v52 = vld [vmem:[#allocation5 + $0x30] sm:$0xff] }
 0x25e   :  { %v1064_v25 = vld [vmem:[#allocation5 + $0x190] sm:$0xff] }
 0x260   :  { %2292 = vmatpush1.bf16.msra.mxu1 %v2941_v15  ;;  %v818_v15 = vld [vmem:[#allocation5 + $0x168] sm:$0xff]  ;;  %2260 = vmatpush1.bf16.msra.mxu0 %v3083_v62 }
 0x261   :  { %2294 = vmatprep.subr.bf16.mxu1 %v2944_v18  ;;  %v813_v18 = vld [vmem:[#allocation5 + $0x140] sm:$0xff] }
 0x264   :  { %2296 = vmatpush1.bf16.msra.mxu1 %v2953_v31  ;;  %v3087_v31 = vpack.c.bf16 %v818_v15, %v814_v1  ;;  %v3118_v1 = vpack.c.bf16 %v1020_v52, %v1016_v48  ;;  %v1023_v15 = vld [vmem:[#allocation5 + $0x48] sm:$0xff]  ;;  %v1068_v48 = vld [vmem:[#allocation5 + $0x1b0] sm:$0xff]  ;;  %v1073_v52 = vld [vmem:[#allocation5 + $0x1d8] sm:$0xff] }
 0x265   :  { %2298 = vmatprep.subr.bf16.mxu1 %v2956_v32  ;;  %v817_v32 = vld [vmem:[#allocation5 + $0x160] sm:$0xff] }
 0x266   :  { %2262 = vmatprep.subr.bf16.mxu0 %v3087_v31 }
 0x268   :  { %2300 = vmatpush1.bf16.msra.mxu1 %v2963_v40  ;;  %v822_v40 = vld [vmem:[#allocation5 + $0x188] sm:$0xff] }
 0x269   :  { %2302 = vmatprep.subr.bf16.mxu1 %v2966_v41  ;;  %v826_v41 = vld [vmem:[#allocation5 + $0x1a8] sm:$0xff] }
 0x26a   :  { %v3091_v13 = vpack.c.bf16 %v826_v41, %v822_v40  ;;  %v1029_v41 = vld [vmem:[#allocation5 + $0x78] sm:$0xff] }
 0x26c   :  { %2304 = vmatpush1.bf16.msra.mxu1 %v2970_v47  ;;  %v3089_v47 = vpack.c.bf16 %v817_v32, %v813_v18  ;;  %v1027_v18 = vld [vmem:[#allocation5 + $0x68] sm:$0xff]  ;;  %v1025_v32 = vld [vmem:[#allocation5 + $0x58] sm:$0xff] }
 0x26d   :  { %v3123_v40 = vpack.c.bf16 %v1027_v18, %v1023_v15  ;;  %v3125_v20 = vpack.c.bf16 %v1029_v41, %v1025_v32  ;;  %v1077_v15 = vld [vmem:[#allocation5 + $0x1f8] sm:$0xff]  ;;  %v3174_v18 = vpack.c.bf16 %v1068_v48, %v1064_v25  ;;  %v1072_v41 = vld [vmem:[#allocation5 + $0x1d0] sm:$0xff] }
 0x26e   :  { %2264 = vmatpush1.bf16.msra.mxu0 %v3089_v47  ;;  %v3177_v32 = vpack.c.bf16 %v1077_v15, %v1073_v52  ;;  %v3182_v19 = vpack.c.bf16 %v1076_v16, %v1072_v41 }
 0x26f   :  { %2266 = vmatprep.subr.bf16.mxu0 %v3091_v13 }
 0x272   :  { %2268 = vmatpush1.bf16.msra.mxu0 %v3095_v23 }
 0x273   :  { %2270 = vmatprep.subr.bf16.mxu0 %v3098_v28 }
 0x276   :  { %2272 = vmatpush1.bf16.msra.mxu0 %v3101_v35 }
 0x277   :  { %2306 = vmatprep.subr.bf16.mxu0 %v3111_v9 }
 0x322   :  { %v667_v43 = vpop.f32.mrb[4].mxu0  ;;  %v738_v30 = vpop.f32.mrb[4].mxu1 }
 0x323   :  { %v743_v42 = vadd.f32 %v667_v43, %v597_v36  ;;  %v669_v46 = vpop.f32.mrb[5].mxu0  ;;  %v740_v55 = vpop.f32.mrb[5].mxu1  ;;  %v745_v39 = vadd.f32 %v738_v30, %v599_v27  ;;  %v3130_v36 = vpack.c.bf16 %v1028_v34, %v1024_v29  ;;  %v1035_v43 = vld [vmem:[#allocation5 + $0xa8] sm:$0xff]  ;;  %v1033_v30 = vld [vmem:[#allocation5 + $0x98] sm:$0xff]  ;;  %v838_v29 = vld [vmem:[#allocation2 + $0x60] sm:$0xff] }
 0x324   :  { %v744_v58 = vadd.f32 %v669_v46, %v598_v38  ;;  %v746_v44 = vadd.f32 %v740_v55, %v600_v24  ;;  %v1031_v38 = vld [vmem:[#allocation5 + $0x88] sm:$0xff]  ;;  %v1037_v46 = vld [vmem:[#allocation5 + $0xb8] sm:$0xff]  ;;  %v1030_v55 = vld [vmem:[#allocation5 + $0x80] sm:$0xff] }
 0x325   :  { %v2031_v7 = vmul.f32 -1.442695, %v743_v42  ;;  %v3135_v42 = vpack.c.bf16 %v1035_v43, %v1031_v38  ;;  %v1032_v24 = vld [vmem:[#allocation5 + $0x90] sm:$0xff]  ;;  %v839_v34 = vld [vmem:[#allocation2 + $0x68] sm:$0xff] }
 0x326   :  { %v2032_v10 = vmul.f32 -1.442695, %v744_v58  ;;  %v2033_v49 = vmul.f32 -1.442695, %v746_v44  ;;  %v1034_v58 = vld [vmem:[#allocation5 + $0xa0] sm:$0xff]  ;;  %v1036_v44 = vld [vmem:[#allocation5 + $0xb0] sm:$0xff] }
 0x327   :  { %2603 = vpow2.f32 %v2031_v7  ;;  %v3137_v7 = vpack.c.bf16 %v1037_v46, %v1033_v30  ;;  %v3142_v27 = vpack.c.bf16 %v1036_v44, %v1032_v24 }
 0x328   :  { %2605 = vpow2.f32 %v2032_v10  ;;  %v3139_v10 = vpack.c.bf16 %v1034_v58, %v1030_v55 }
 0x329   :  { %2607 = vpow2.f32 %v2033_v49  ;;  %v1041_v49 = vld [vmem:[#allocation5 + $0xd8] sm:$0xff] }
 0x32a   :  { %2609 = vtanh.f32 %v745_v39  ;;  %v1045_v39 = vld [vmem:[#allocation5 + $0xf8] sm:$0xff] }
 0x331   :  { %v2604_v50 = vpop.eup %2603 }
 0x332   :  { %v2606_v51 = vpop.eup %2605  ;;  %v750_v53 = vadd.f32 1.0, %v2604_v50  ;;  %v3148_v50 = vpack.c.bf16 %v1045_v39, %v1041_v49  ;;  %v841_v49 = vld [vmem:[#allocation2 + $0x78] sm:$0xff] }
 0x333   :  { %v756_v4 = vadd.f32 1.0, %v2606_v51  ;;  %v2608_v54 = vpop.eup %2607  ;;  %v1040_v51 = vld [vmem:[#allocation5 + $0xd0] sm:$0xff] }
 0x334   :  { %2611 = vrcp.f32 %v750_v53  ;;  %v2610_v22 = vpop.eup %2609  ;;  %v763_v60 = vadd.f32 1.0, %v2608_v54  ;;  %v1044_v53 = vld [vmem:[#allocation5 + $0xf0] sm:$0xff]  ;;  %v1049_v54 = vld [vmem:[#allocation5 + $0x118] sm:$0xff] }
 0x335   :  { %2613 = vrcp.f32 %v756_v4  ;;  %v3150_v4 = vpack.c.bf16 %v1044_v53, %v1040_v51  ;;  %v840_v51 = vld [vmem:[#allocation2 + $0x70] sm:$0xff] }
 0x336   :  { %2615 = vrcp.f32 %v763_v60 }
 0x33e   :  { %v2612_v56 = vpop.eup %2611 }
 0x33f   :  { %v2614_v57 = vpop.eup %2613  ;;  %v767_v59 = vmul.f32 %v2612_v56, %v2610_v22  ;;  %v1053_v22 = vld [vmem:[#allocation5 + $0x138] sm:$0xff] }
 0x340   :  { %v766_v61 = vmul.f32 %v2614_v57, %v3050_v5  ;;  %v2616_v2 = vpop.eup %2615  ;;  %v1021_v5 = vld [vmem:[#allocation5 + $0x38] sm:$0xff]  ;;  %v3156_v56 = vpack.c.bf16 %v1053_v22, %v1049_v54  ;;  %v1048_v57 = vld [vmem:[#allocation5 + $0x110] sm:$0xff] }
 0x341   :  { %v3113_v33 = vpack.c.bf16 %v1021_v5, %v1017_v8  ;;  %v1069_v8 = vld [vmem:[#allocation5 + $0x1b8] sm:$0xff] }
 0x342   :  { %v3106_v63 = vadd.f32 %v767_v59, %v766_v61  ;;  %v1052_v59 = vld [vmem:[#allocation5 + $0x130] sm:$0xff]  ;;  %v1057_v61 = vld [vmem:[#allocation5 + $0x158] sm:$0xff]  ;;  %v3169_v17 = vpack.c.bf16 %v1069_v8, %v1065_v12 }
 0x343   :  { %2338 = vmatprep.subr.bf16.mxu1 %v3113_v33  ;;  %v3158_v60 = vpack.c.bf16 %v1052_v59, %v1048_v57 }
 0x344   :  { %2617 = vtanh.f32 %v3106_v63 }
 0x34e   :  { %v2618_v3 = vpop.eup %2617 }
 0x34f   :  { %v770_v6 = vmul.f32 %v2618_v3, %v2616_v2  ;;  %v1061_v2 = vld [vmem:[#allocation5 + $0x178] sm:$0xff]  ;;  %v1056_v3 = vld [vmem:[#allocation5 + $0x150] sm:$0xff] }
 0x350   :  { %v3166_v5 = vpack.c.bf16 %v1060_v11, %v1056_v3 }
 0x351   :  { %772 = vst [vmem:[#allocation7 + $0x10] sm:$0xff] %v770_v6  ;;  %907 = vmatmul.mubr.f32.vlgmr.msra.gmra.mrb[6].mxu0 %v770_v6  ;;  %978 = vmatmul.mubr.f32.vlgmr.msra.gmra.mrb[6].mxu1 %v770_v6  ;;  %v3162_v6 = vpack.c.bf16 %v1061_v2, %v1057_v61 }
 0x352   :  { %1147 = vmatprep.mubr.f32.mxu0 %v2821_v0  ;;  %1218 = vmatprep.mubr.f32.mxu1 %v2821_v0 }
 0x353   :  { %2308 = vmatpush1.bf16.msra.mxu0 %v3115_v37  ;;  %2340 = vmatpush1.bf16.msra.mxu1 %v3118_v1 }
 0x354   :  { %2310 = vmatprep.subr.bf16.mxu0 %v3123_v40  ;;  %2342 = vmatprep.subr.bf16.mxu1 %v3125_v20 }
 0x357   :  { %2312 = vmatpush1.bf16.msra.mxu0 %v3127_v21  ;;  %2344 = vmatpush1.bf16.msra.mxu1 %v3130_v36 }
 0x358   :  { %2314 = vmatprep.subr.bf16.mxu0 %v3135_v42  ;;  %2346 = vmatprep.subr.bf16.mxu1 %v3137_v7 }
 0x35b   :  { %2316 = vmatpush1.bf16.msra.mxu0 %v3139_v10  ;;  %2348 = vmatpush1.bf16.msra.mxu1 %v3142_v27 }
 0x35c   :  { %2318 = vmatprep.subr.bf16.mxu0 %v3075_v14  ;;  %2350 = vmatprep.subr.bf16.mxu1 %v3148_v50 }
 0x35f   :  { %2320 = vmatpush1.bf16.msra.mxu0 %v3077_v26  ;;  %2352 = vmatpush1.bf16.msra.mxu1 %v3150_v4 }
 0x360   :  { %2322 = vmatprep.subr.bf16.mxu0 %v3081_v45  ;;  %2354 = vmatprep.subr.bf16.mxu1 %v3156_v56 }
 0x363   :  { %2324 = vmatpush1.bf16.msra.mxu0 %v3083_v62  ;;  %2356 = vmatpush1.bf16.msra.mxu1 %v3158_v60 }
 0x364   :  { %2326 = vmatprep.subr.bf16.mxu0 %v3087_v31  ;;  %2358 = vmatprep.subr.bf16.mxu1 %v3162_v6 }
 0x367   :  { %2328 = vmatpush1.bf16.msra.mxu0 %v3089_v47  ;;  %2360 = vmatpush1.bf16.msra.mxu1 %v3166_v5 }
 0x368   :  { %2330 = vmatprep.subr.bf16.mxu0 %v3091_v13  ;;  %2362 = vmatprep.subr.bf16.mxu1 %v3169_v17 }
 0x36b   :  { %2332 = vmatpush1.bf16.msra.mxu0 %v3095_v23  ;;  %2364 = vmatpush1.bf16.msra.mxu1 %v3174_v18 }
 0x36c   :  { %2334 = vmatprep.subr.bf16.mxu0 %v3098_v28  ;;  %2366 = vmatprep.subr.bf16.mxu1 %v3177_v32 }
 0x36f   :  { %2336 = vmatpush1.bf16.msra.mxu0 %v3101_v35  ;;  %2368 = vmatpush1.bf16.msra.mxu1 %v3182_v19 }
 0x370   :  { %2370 = vmatprep.subr.bf16.mxu0 %v3111_v9  ;;  %2402 = vmatprep.subr.bf16.mxu1 %v3113_v33 }
 0x424   :  { %v908_v38 = vpop.f32.mrb[6].mxu0  ;;  %v979_v43 = vpop.f32.mrb[6].mxu1 }
 0x425   :  { %v984_v30 = vadd.f32 %v908_v38, %v838_v29  ;;  %v910_v46 = vpop.f32.mrb[7].mxu0  ;;  %v981_v55 = vpop.f32.mrb[7].mxu1  ;;  %v986_v54 = vadd.f32 %v979_v43, %v840_v51  ;;  %v1080_v29 = vld [vmem:[#allocation2 + $0x88] sm:$0xff] }
 0x426   :  { %v985_v58 = vadd.f32 %v910_v46, %v839_v34  ;;  %v987_v39 = vadd.f32 %v981_v55, %v841_v49 }
 0x427   :  { %v2034_v24 = vmul.f32 -1.442695, %v984_v30 }
 0x428   :  { %v2035_v44 = vmul.f32 -1.442695, %v985_v58  ;;  %v2036_v53 = vmul.f32 -1.442695, %v987_v39  ;;  %v1081_v39 = vld [vmem:[#allocation2 + $0x90] sm:$0xff] }
 0x429   :  { %2619 = vpow2.f32 %v2034_v24 }
 0x42a   :  { %2621 = vpow2.f32 %v2035_v44  ;;  %v1082_v44 = vld [vmem:[#allocation2 + $0x98] sm:$0xff] }
 0x42b   :  { %2623 = vpow2.f32 %v2036_v53 }
 0x42c   :  { %2625 = vtanh.f32 %v986_v54 }
 0x433   :  { %v2620_v22 = vpop.eup %2619 }
 0x434   :  { %v2622_v57 = vpop.eup %2621  ;;  %v991_v59 = vadd.f32 1.0, %v2620_v22 }
 0x435   :  { %v997_v61 = vadd.f32 1.0, %v2622_v57  ;;  %v2624_v2 = vpop.eup %2623 }
 0x436   :  { %2627 = vrcp.f32 %v991_v59  ;;  %v2626_v3 = vpop.eup %2625  ;;  %v1004_v25 = vadd.f32 1.0, %v2624_v2 }
 0x437   :  { %2629 = vrcp.f32 %v997_v61 }
 0x438   :  { %2631 = vrcp.f32 %v1004_v25 }
 0x440   :  { %v2628_v11 = vpop.eup %2627 }
 0x441   :  { %v2630_v12 = vpop.eup %2629  ;;  %v1008_v8 = vmul.f32 %v2628_v11, %v2626_v3 }
 0x442   :  { %v1007_v48 = vmul.f32 %v2630_v12, %v3106_v63  ;;  %v2632_v15 = vpop.eup %2631  ;;  %v1079_v63 = vld [vmem:[#allocation2 + $0x80] sm:$0xff] }
 0x444   :  { %v3190_v52 = vadd.f32 %v1008_v8, %v1007_v48 }
 0x446   :  { %2633 = vtanh.f32 %v3190_v52 }
 0x450   :  { %v2634_v41 = vpop.eup %2633 }
 0x451   :  { %v1011_v16 = vmul.f32 %v2634_v41, %v2632_v15 }
 0x453   :  { %1013 = vst [vmem:[#allocation7 + $0x18] sm:$0xff] %v1011_v16  ;;  %1148 = vmatmul.mubr.f32.vlgmr.msra.gmra.mrb[8].mxu0 %v1011_v16  ;;  %1219 = vmatmul.mubr.f32.vlgmr.msra.gmra.mrb[8].mxu1 %v1011_v16 }
 0x454   :  { %2372 = vmatpush1.bf16.msra.mxu0 %v3115_v37  ;;  %2404 = vmatpush1.bf16.msra.mxu1 %v3118_v1 }
 0x455   :  { %2374 = vmatprep.subr.bf16.mxu0 %v3123_v40  ;;  %2406 = vmatprep.subr.bf16.mxu1 %v3125_v20 }
 0x456   :  { %1388 = vmatprep.mubr.f32.mxu0 %v2821_v0  ;;  %1459 = vmatprep.mubr.f32.mxu1 %v2821_v0 }
 0x458   :  { %2376 = vmatpush1.bf16.msra.mxu0 %v3127_v21  ;;  %2408 = vmatpush1.bf16.msra.mxu1 %v3130_v36 }
 0x459   :  { %2378 = vmatprep.subr.bf16.mxu0 %v3135_v42  ;;  %2410 = vmatprep.subr.bf16.mxu1 %v3137_v7 }
 0x45c   :  { %2380 = vmatpush1.bf16.msra.mxu0 %v3139_v10  ;;  %2412 = vmatpush1.bf16.msra.mxu1 %v3142_v27 }
 0x45d   :  { %2382 = vmatprep.subr.bf16.mxu0 %v3075_v14  ;;  %2414 = vmatprep.subr.bf16.mxu1 %v3148_v50 }
 0x460   :  { %2384 = vmatpush1.bf16.msra.mxu0 %v3077_v26  ;;  %2416 = vmatpush1.bf16.msra.mxu1 %v3150_v4 }
 0x461   :  { %2386 = vmatprep.subr.bf16.mxu0 %v3081_v45  ;;  %2418 = vmatprep.subr.bf16.mxu1 %v3156_v56 }
 0x464   :  { %2388 = vmatpush1.bf16.msra.mxu0 %v3083_v62  ;;  %2420 = vmatpush1.bf16.msra.mxu1 %v3158_v60 }
 0x465   :  { %2390 = vmatprep.subr.bf16.mxu0 %v3087_v31  ;;  %2422 = vmatprep.subr.bf16.mxu1 %v3162_v6 }
 0x468   :  { %2392 = vmatpush1.bf16.msra.mxu0 %v3089_v47  ;;  %2424 = vmatpush1.bf16.msra.mxu1 %v3166_v5 }
 0x469   :  { %2394 = vmatprep.subr.bf16.mxu0 %v3091_v13  ;;  %2426 = vmatprep.subr.bf16.mxu1 %v3169_v17 }
 0x46c   :  { %2396 = vmatpush1.bf16.msra.mxu0 %v3095_v23  ;;  %2428 = vmatpush1.bf16.msra.mxu1 %v3174_v18 }
 0x46d   :  { %2398 = vmatprep.subr.bf16.mxu0 %v3098_v28  ;;  %2430 = vmatprep.subr.bf16.mxu1 %v3177_v32 }
 0x470   :  { %2400 = vmatpush1.bf16.msra.mxu0 %v3101_v35  ;;  %2432 = vmatpush1.bf16.msra.mxu1 %v3182_v19 }
 0x471   :  { %2434 = vmatprep.subr.bf16.mxu0 %v3111_v9  ;;  %2466 = vmatprep.subr.bf16.mxu1 %v3113_v33 }
 0x526   :  { %v1149_v34 = vpop.f32.mrb[8].mxu0  ;;  %v1220_v38 = vpop.f32.mrb[8].mxu1 }
 0x527   :  { %v1225_v43 = vadd.f32 %v1149_v34, %v1079_v63  ;;  %v1151_v30 = vpop.f32.mrb[9].mxu0  ;;  %v1222_v46 = vpop.f32.mrb[9].mxu1  ;;  %v1227_v53 = vadd.f32 %v1220_v38, %v1081_v39  ;;  %v1323_v63 = vld [vmem:[#allocation2 + $0xb8] sm:$0xff] }
 0x528   :  { %v1226_v55 = vadd.f32 %v1151_v30, %v1080_v29  ;;  %v1228_v49 = vadd.f32 %v1222_v46, %v1082_v44  ;;  %v1322_v29 = vld [vmem:[#allocation2 + $0xb0] sm:$0xff] }
 0x529   :  { %v2037_v58 = vmul.f32 -1.442695, %v1225_v43 }
 0x52a   :  { %v2038_v24 = vmul.f32 -1.442695, %v1226_v55  ;;  %v2039_v51 = vmul.f32 -1.442695, %v1228_v49 }
 0x52b   :  { %2635 = vpow2.f32 %v2037_v58 }
 0x52c   :  { %2637 = vpow2.f32 %v2038_v24 }
 0x52d   :  { %2639 = vpow2.f32 %v2039_v51 }
 0x52e   :  { %2641 = vtanh.f32 %v1227_v53 }
 0x535   :  { %v2636_v54 = vpop.eup %2635 }
 0x536   :  { %v2638_v22 = vpop.eup %2637  ;;  %v1232_v57 = vadd.f32 1.0, %v2636_v54 }
 0x537   :  { %v1238_v59 = vadd.f32 1.0, %v2638_v22  ;;  %v2640_v61 = vpop.eup %2639 }
 0x538   :  { %2643 = vrcp.f32 %v1232_v57  ;;  %v2642_v2 = vpop.eup %2641  ;;  %v1245_v8 = vadd.f32 1.0, %v2640_v61  ;;  %v1785_v57 = vld [vmem:[#allocation5 + $0x180] sm:$0xff]  ;;  %v1794_v61 = vld [vmem:[#allocation5 + $0x1c8] sm:$0xff] }
 0x539   :  { %2645 = vrcp.f32 %v1238_v59  ;;  %v1789_v59 = vld [vmem:[#allocation5 + $0x1a0] sm:$0xff] }
 0x53a   :  { %2647 = vrcp.f32 %v1245_v8  ;;  %v1797_v8 = vld [vmem:[#allocation5 + $0x1e0] sm:$0xff] }
 0x542   :  { %v2644_v3 = vpop.eup %2643 }
 0x543   :  { %v2646_v11 = vpop.eup %2645  ;;  %v1249_v12 = vmul.f32 %v2644_v3, %v2642_v2  ;;  %v1798_v2 = vld [vmem:[#allocation5 + $0x1e8] sm:$0xff]  ;;  %v2523_v3 = vpack.c.bf16 %v1789_v59, %v1785_v57 }
 0x544   :  { %v1248_v25 = vmul.f32 %v2646_v11, %v3190_v52  ;;  %v2648_v15 = vpop.eup %2647  ;;  %v2525_v11 = vpack.c.bf16 %v1798_v2, %v1794_v61 }
 0x546   :  { %v3228_v48 = vadd.f32 %v1249_v12, %v1248_v25  ;;  %v1793_v12 = vld [vmem:[#allocation5 + $0x1c0] sm:$0xff] }
 0x547   :  { %v2527_v25 = vpack.c.bf16 %v1797_v8, %v1793_v12 }
 0x548   :  { %2649 = vtanh.f32 %v3228_v48 }
 0x552   :  { %v2650_v41 = vpop.eup %2649 }
 0x553   :  { %v1252_v16 = vmul.f32 %v2650_v41, %v2648_v15  ;;  %v1562_v15 = vld [vmem:[#allocation2 + $0xc8] sm:$0xff] }
 0x555   :  { %1254 = vst [vmem:[#allocation7 + $0x20] sm:$0xff] %v1252_v16  ;;  %1389 = vmatmul.mubr.f32.vlgmr.msra.gmra.mrb[10].mxu0 %v1252_v16  ;;  %1460 = vmatmul.mubr.f32.vlgmr.msra.gmra.mrb[10].mxu1 %v1252_v16 }
 0x556   :  { %2436 = vmatpush1.bf16.msra.mxu0 %v3115_v37  ;;  %2468 = vmatpush1.bf16.msra.mxu1 %v3118_v1 }
 0x557   :  { %2438 = vmatprep.subr.bf16.mxu0 %v3123_v40  ;;  %2470 = vmatprep.subr.bf16.mxu1 %v3125_v20 }
 0x558   :  { %1629 = vmatprep.mubr.f32.mxu0 %v2821_v0  ;;  %1700 = vmatprep.mubr.f32.mxu1 %v2821_v0 }
 0x55a   :  { %2440 = vmatpush1.bf16.msra.mxu0 %v3127_v21  ;;  %2472 = vmatpush1.bf16.msra.mxu1 %v3130_v36 }
 0x55b   :  { %2442 = vmatprep.subr.bf16.mxu0 %v3135_v42  ;;  %2474 = vmatprep.subr.bf16.mxu1 %v3137_v7 }
 0x55e   :  { %2444 = vmatpush1.bf16.msra.mxu0 %v3139_v10  ;;  %2476 = vmatpush1.bf16.msra.mxu1 %v3142_v27 }
 0x55f   :  { %2446 = vmatprep.subr.bf16.mxu0 %v3075_v14  ;;  %2478 = vmatprep.subr.bf16.mxu1 %v3148_v50  ;;  %v1320_v14 = vld [vmem:[#allocation2 + $0xa0] sm:$0xff] }
 0x562   :  { %2448 = vmatpush1.bf16.msra.mxu0 %v3077_v26  ;;  %2480 = vmatpush1.bf16.msra.mxu1 %v3150_v4  ;;  %v1321_v26 = vld [vmem:[#allocation2 + $0xa8] sm:$0xff] }
 0x563   :  { %2450 = vmatprep.subr.bf16.mxu0 %v3081_v45  ;;  %2482 = vmatprep.subr.bf16.mxu1 %v3156_v56 }
 0x566   :  { %2452 = vmatpush1.bf16.msra.mxu0 %v3083_v62  ;;  %2484 = vmatpush1.bf16.msra.mxu1 %v3158_v60 }
 0x567   :  { %2454 = vmatprep.subr.bf16.mxu0 %v3087_v31  ;;  %2486 = vmatprep.subr.bf16.mxu1 %v3162_v6 }
 0x56a   :  { %2456 = vmatpush1.bf16.msra.mxu0 %v3089_v47  ;;  %2488 = vmatpush1.bf16.msra.mxu1 %v3166_v5 }
 0x56b   :  { %2458 = vmatprep.subr.bf16.mxu0 %v3091_v13  ;;  %2490 = vmatprep.subr.bf16.mxu1 %v3169_v17 }
 0x56e   :  { %2460 = vmatpush1.bf16.msra.mxu0 %v3095_v23  ;;  %2492 = vmatpush1.bf16.msra.mxu1 %v3174_v18 }
 0x56f   :  { %2462 = vmatprep.subr.bf16.mxu0 %v3098_v28  ;;  %2494 = vmatprep.subr.bf16.mxu1 %v3177_v32 }
 0x572   :  { %2464 = vmatpush1.bf16.msra.mxu0 %v3101_v35  ;;  %2496 = vmatpush1.bf16.msra.mxu1 %v3182_v19 }
 0x573   :  { %2498 = vmatprep.subr.bf16.mxu0 %v3111_v9  ;;  %2530 = vmatprep.subr.bf16.mxu1 %v3113_v33 }
 0x628   :  { %v1390_v45 = vpop.f32.mrb[10].mxu0  ;;  %v1461_v62 = vpop.f32.mrb[10].mxu1 }
 0x629   :  { %v1466_v31 = vadd.f32 %v1390_v45, %v1320_v14  ;;  %v1392_v47 = vpop.f32.mrb[11].mxu0  ;;  %v1463_v13 = vpop.f32.mrb[11].mxu1  ;;  %v1468_v38 = vadd.f32 %v1461_v62, %v1322_v29 }
 0x62a   :  { %v1467_v23 = vadd.f32 %v1392_v47, %v1321_v26  ;;  %v1469_v35 = vadd.f32 %v1463_v13, %v1323_v63  ;;  %v1564_v13 = vld [vmem:[#allocation2 + $0xd8] sm:$0xff] }
 0x62b   :  { %v2040_v52 = vmul.f32 -1.442695, %v1466_v31 }
 0x62c   :  { %v2041_v28 = vmul.f32 -1.442695, %v1467_v23  ;;  %v2042_v34 = vmul.f32 -1.442695, %v1469_v35 }
 0x62d   :  { %2651 = vpow2.f32 %v2040_v52  ;;  %v1563_v52 = vld [vmem:[#allocation2 + $0xd0] sm:$0xff] }
 0x62e   :  { %2653 = vpow2.f32 %v2041_v28 }
 0x62f   :  { %2655 = vpow2.f32 %v2042_v34 }
 0x630   :  { %2657 = vtanh.f32 %v1468_v38 }
 0x637   :  { %v2652_v9 = vpop.eup %2651 }
 0x638   :  { %v2654_v43 = vpop.eup %2653  ;;  %v1473_v33 = vadd.f32 1.0, %v2652_v9 }
 0x639   :  { %v1479_v30 = vadd.f32 1.0, %v2654_v43  ;;  %v2656_v46 = vpop.eup %2655 }
 0x63a   :  { %2659 = vrcp.f32 %v1473_v33  ;;  %v2658_v55 = vpop.eup %2657  ;;  %v1486_v49 = vadd.f32 1.0, %v2656_v46 }
 0x63b   :  { %2661 = vrcp.f32 %v1479_v30 }
 0x63c   :  { %2663 = vrcp.f32 %v1486_v49 }
 0x644   :  { %v2660_v58 = vpop.eup %2659 }
 0x645   :  { %v2662_v24 = vpop.eup %2661  ;;  %v1490_v44 = vmul.f32 %v2660_v58, %v2658_v55 }
 0x646   :  { %v1489_v39 = vmul.f32 %v2662_v24, %v3228_v48  ;;  %v2664_v53 = vpop.eup %2663  ;;  %v1561_v48 = vld [vmem:[#allocation2 + $0xc0] sm:$0xff] }
 0x648   :  { %v3266_v51 = vadd.f32 %v1490_v44, %v1489_v39 }
 0x64a   :  { %2665 = vtanh.f32 %v3266_v51 }
 0x654   :  { %v2666_v54 = vpop.eup %2665 }
 0x655   :  { %v1493_v22 = vmul.f32 %v2666_v54, %v2664_v53  ;;  %v1802_v53 = vld [vmem:[#allocation2 + $0xe0] sm:$0xff]  ;;  %v1803_v54 = vld [vmem:[#allocation2 + $0xe8] sm:$0xff] }
 0x657   :  { %1495 = vst [vmem:[#allocation7 + $0x28] sm:$0xff] %v1493_v22  ;;  %1630 = vmatmul.mubr.f32.vlgmr.msra.gmra.mrb[12].mxu0 %v1493_v22  ;;  %1701 = vmatmul.mubr.f32.vlgmr.msra.gmra.mrb[12].mxu1 %v1493_v22 }
 0x658   :  { %2500 = vmatpush1.bf16.msra.mxu0 %v3115_v37  ;;  %2532 = vmatpush1.bf16.msra.mxu1 %v3118_v1  ;;  %v1766_v37 = vld [vmem:[#allocation5 + $0xe8] sm:$0xff] }
 0x659   :  { %2502 = vmatprep.subr.bf16.mxu0 %v3123_v40  ;;  %2534 = vmatprep.subr.bf16.mxu1 %v3125_v20  ;;  %v1761_v40 = vld [vmem:[#allocation5 + $0xc0] sm:$0xff] }
 0x65a   :  { %1870 = vmatprep.mubr.f32.mxu0 %v2821_v0  ;;  %1941 = vmatprep.mubr.f32.mxu1 %v2821_v0  ;;  %v1762_v0 = vld [vmem:[#allocation5 + $0xc8] sm:$0xff]  ;;  %v1765_v20 = vld [vmem:[#allocation5 + $0xe0] sm:$0xff] }
 0x65b   :  { %v2509_v1 = vpack.c.bf16 %v1766_v37, %v1762_v0 }
 0x65c   :  { %2504 = vmatpush1.bf16.msra.mxu0 %v3127_v21  ;;  %2536 = vmatpush1.bf16.msra.mxu1 %v3130_v36  ;;  %v2511_v21 = vpack.c.bf16 %v1765_v20, %v1761_v40  ;;  %v1770_v36 = vld [vmem:[#allocation5 + $0x108] sm:$0xff] }
 0x65d   :  { %2506 = vmatprep.subr.bf16.mxu0 %v3135_v42  ;;  %2538 = vmatprep.subr.bf16.mxu1 %v3137_v7  ;;  %v1774_v42 = vld [vmem:[#allocation5 + $0x128] sm:$0xff] }
 0x65e   :  { %v2513_v7 = vpack.c.bf16 %v1774_v42, %v1770_v36 }
 0x660   :  { %2508 = vmatpush1.bf16.msra.mxu0 %v3139_v10  ;;  %2540 = vmatpush1.bf16.msra.mxu1 %v3142_v27  ;;  %v1769_v10 = vld [vmem:[#allocation5 + $0x100] sm:$0xff] }
 0x661   :  { %2542 = vmatprep.subr.bf16.mxu1 %v3148_v50  ;;  %2510 = vmatprep.subr.bf16.mxu0 %v2509_v1  ;;  %v1773_v27 = vld [vmem:[#allocation5 + $0x120] sm:$0xff] }
 0x662   :  { %v2515_v50 = vpack.c.bf16 %v1773_v27, %v1769_v10 }
 0x664   :  { %2544 = vmatpush1.bf16.msra.mxu1 %v3150_v4  ;;  %2512 = vmatpush1.bf16.msra.mxu0 %v2511_v21  ;;  %v1778_v4 = vld [vmem:[#allocation5 + $0x148] sm:$0xff] }
 0x665   :  { %2546 = vmatprep.subr.bf16.mxu1 %v3156_v56  ;;  %2514 = vmatprep.subr.bf16.mxu0 %v2513_v7  ;;  %v1782_v56 = vld [vmem:[#allocation5 + $0x168] sm:$0xff]  ;;  %v1804_v7 = vld [vmem:[#allocation2 + $0xf0] sm:$0xff] }
 0x668   :  { %2548 = vmatpush1.bf16.msra.mxu1 %v3158_v60  ;;  %v1777_v60 = vld [vmem:[#allocation5 + $0x140] sm:$0xff]  ;;  %2516 = vmatpush1.bf16.msra.mxu0 %v2515_v50 }
 0x669   :  { %2550 = vmatprep.subr.bf16.mxu1 %v3162_v6  ;;  %v2517_v6 = vpack.c.bf16 %v1782_v56, %v1778_v4 }
 0x66b   :  { %2518 = vmatprep.subr.bf16.mxu0 %v2517_v6 }
 0x66c   :  { %2552 = vmatpush1.bf16.msra.mxu1 %v3166_v5  ;;  %v1781_v5 = vld [vmem:[#allocation5 + $0x160] sm:$0xff] }
 0x66d   :  { %2554 = vmatprep.subr.bf16.mxu1 %v3169_v17  ;;  %v1786_v17 = vld [vmem:[#allocation5 + $0x188] sm:$0xff] }
 0x670   :  { %2556 = vmatpush1.bf16.msra.mxu1 %v3174_v18  ;;  %v1790_v18 = vld [vmem:[#allocation5 + $0x1a8] sm:$0xff] }
 0x671   :  { %2558 = vmatprep.subr.bf16.mxu1 %v3177_v32  ;;  %v2519_v32 = vpack.c.bf16 %v1781_v5, %v1777_v60 }
 0x673   :  { %2520 = vmatpush1.bf16.msra.mxu0 %v2519_v32 }
 0x674   :  { %2560 = vmatpush1.bf16.msra.mxu1 %v3182_v19  ;;  %v2521_v19 = vpack.c.bf16 %v1790_v18, %v1786_v17 }
 0x676   :  { %2522 = vmatprep.subr.bf16.mxu0 %v2521_v19 }
 0x677   :  { %2524 = vmatpush1.bf16.msra.mxu0 %v2523_v3 }
 0x678   :  { %2526 = vmatprep.subr.bf16.mxu0 %v2525_v11 }
 0x67b   :  { %2528 = vmatpush1.bf16.msra.mxu0 %v2527_v25 }
 0x72a   :  { %v1631_v41 = vpop.f32.mrb[12].mxu0  ;;  %v1702_v16 = vpop.f32.mrb[12].mxu1 }
 0x72b   :  { %v1707_v14 = vadd.f32 %v1631_v41, %v1561_v48  ;;  %v1633_v26 = vpop.f32.mrb[13].mxu0  ;;  %v1704_v45 = vpop.f32.mrb[13].mxu1  ;;  %v1709_v63 = vadd.f32 %v1702_v16, %v1563_v52 }
 0x72c   :  { %v1708_v62 = vadd.f32 %v1633_v26, %v1562_v15  ;;  %v1710_v23 = vadd.f32 %v1704_v45, %v1564_v13 }
 0x72d   :  { %v2043_v31 = vmul.f32 -1.442695, %v1707_v14 }
 0x72e   :  { %v2044_v47 = vmul.f32 -1.442695, %v1708_v62  ;;  %v2045_v28 = vmul.f32 -1.442695, %v1710_v23 }
 0x72f   :  { %2667 = vpow2.f32 %v2043_v31 }
 0x730   :  { %2669 = vpow2.f32 %v2044_v47 }
 0x731   :  { %2671 = vpow2.f32 %v2045_v28 }
 0x732   :  { %2673 = vtanh.f32 %v1709_v63 }
 0x739   :  { %v2668_v35 = vpop.eup %2667 }
 0x73a   :  { %v2670_v29 = vpop.eup %2669  ;;  %v1714_v34 = vadd.f32 1.0, %v2668_v35 }
 0x73b   :  { %v1720_v38 = vadd.f32 1.0, %v2670_v29  ;;  %v2672_v9 = vpop.eup %2671 }
 0x73c   :  { %2675 = vrcp.f32 %v1714_v34  ;;  %v2674_v43 = vpop.eup %2673  ;;  %v1727_v55 = vadd.f32 1.0, %v2672_v9 }
 0x73d   :  { %2677 = vrcp.f32 %v1720_v38 }
 0x73e   :  { %2679 = vrcp.f32 %v1727_v55 }
 0x746   :  { %v2676_v33 = vpop.eup %2675 }
 0x747   :  { %v2678_v30 = vpop.eup %2677  ;;  %v1731_v46 = vmul.f32 %v2676_v33, %v2674_v43 }
 0x748   :  { %v1730_v58 = vmul.f32 %v2678_v30, %v3266_v51  ;;  %v2680_v44 = vpop.eup %2679  ;;  %v1805_v51 = vld [vmem:[#allocation2 + $0xf8] sm:$0xff] }
 0x74a   :  { %v1732_v24 = vadd.f32 %v1731_v46, %v1730_v58 }
 0x74c   :  { %2681 = vtanh.f32 %v1732_v24 }
 0x756   :  { %v2682_v49 = vpop.eup %2681 }
 0x757   :  { %v1734_v39 = vmul.f32 %v2682_v49, %v2680_v44 }
 0x759   :  { %1736 = vst [vmem:[#allocation7 + $0x30] sm:$0xff] %v1734_v39  ;;  %1871 = vmatmul.mubr.f32.vlgmr.msra.gmra.mrb[14].mxu0 %v1734_v39  ;;  %1942 = vmatmul.mubr.f32.vlgmr.msra.gmra.mrb[14].mxu1 %v1734_v39 }
 0x82c   :  { %v1872_v22 = vpop.f32.mrb[14].mxu0  ;;  %v1943_v0 = vpop.f32.mrb[14].mxu1 }
 0x82d   :  { %v1948_v37 = vadd.f32 %v1872_v22, %v1802_v53  ;;  %v1874_v1 = vpop.f32.mrb[15].mxu0  ;;  %v1945_v40 = vpop.f32.mrb[15].mxu1  ;;  %v1950_v27 = vadd.f32 %v1943_v0, %v1804_v7 }
 0x82e   :  { %v1949_v20 = vadd.f32 %v1874_v1, %v1803_v54  ;;  %v1951_v42 = vadd.f32 %v1945_v40, %v1805_v51 }
 0x82f   :  { %v2046_v21 = vmul.f32 -1.442695, %v1948_v37 }
 0x830   :  { %v2047_v36 = vmul.f32 -1.442695, %v1949_v20  ;;  %v2048_v10 = vmul.f32 -1.442695, %v1951_v42 }
 0x831   :  { %2683 = vpow2.f32 %v2046_v21 }
 0x832   :  { %2685 = vpow2.f32 %v2047_v36 }
 0x833   :  { %2687 = vpow2.f32 %v2048_v10 }
 0x834   :  { %2689 = vtanh.f32 %v1950_v27 }
 0x83b   :  { %v2684_v50 = vpop.eup %2683 }
 0x83c   :  { %v2686_v4 = vpop.eup %2685  ;;  %v1955_v56 = vadd.f32 1.0, %v2684_v50 }
 0x83d   :  { %v1961_v60 = vadd.f32 1.0, %v2686_v4  ;;  %v2688_v6 = vpop.eup %2687 }
 0x83e   :  { %2691 = vrcp.f32 %v1955_v56  ;;  %v2690_v5 = vpop.eup %2689  ;;  %v1968_v19 = vadd.f32 1.0, %v2688_v6 }
 0x83f   :  { %2693 = vrcp.f32 %v1961_v60 }
 0x840   :  { %2695 = vrcp.f32 %v1968_v19 }
 0x848   :  { %v2692_v17 = vpop.eup %2691 }
 0x849   :  { %v2694_v18 = vpop.eup %2693  ;;  %v1972_v32 = vmul.f32 %v2692_v17, %v2690_v5 }
 0x84a   :  { %v1971_v57 = vmul.f32 %v2694_v18, %v1732_v24  ;;  %v2696_v61 = vpop.eup %2695 }
 0x84c   :  { %v1973_v59 = vadd.f32 %v1972_v32, %v1971_v57 }
 0x84e   :  { %2697 = vtanh.f32 %v1973_v59  ;;  %1979 = vst [vmem:[#allocation10] sm:$0xff] %v1973_v59 }
 0x858   :  { %v2698_v2 = vpop.eup %2697 }
 0x859   :  { %v1975_v3 = vmul.f32 %v2698_v2, %v2696_v61 }
 0x85b   :  { %1977 = vst [vmem:[#allocation7 + $0x38] sm:$0xff] %v1975_v3  ;;  %1978 = vst [vmem:[#allocation8] sm:$0xff] %v1975_v3 }
 0x85c   :  { %2754 = shalt.err (!%p2751_p6)
}
 0x85d   :  { %s2755_s22 = scalar_lea.hbm %s3345_s3, 128 }
 0x85e   :  { %p2756_p7 = scmp.ne.s32.totalorder %s3345_s3, %s2755_s22  ;;  %p2759_p8 = scmp.lt.u32.totalorder %s2755_s22, %s3345_s3 }
 0x860   :  { %p2761_p9 = pnand %p2759_p8, %p2756_p7 }
 0x862   :  { %2764 = shalt.err (!%p2761_p9)
}
 0x863   :  { %2001 = dma.vmem_to_hbm [thread:$0]  %s1999_s14, 128, %s3345_s3, [#allocation9]  }
 0x864   :  { %s2765_s29 = scalar_lea.vmem %s3292_s16, 1024  ;;  %p2770_p11 = scmp.lt.s32.totalorder %s3292_s16, %s3292_s16 }
 0x865   :  { %p2766_p10 = scmp.ne.s32.totalorder %s3292_s16, %s2765_s29  ;;  %p2771_p12 = scmp.lt.s32.totalorder %s2765_s29, %s2765_s29 }
 0x867   :  { %p2772_p13 = por %p2771_p12, %p2770_p11 }
 0x869   :  { %p2773_p0 = pnand %p2772_p13, %p2766_p10 }
 0x86b   :  { %2776 = shalt.err (!%p2773_p0)
}
 0x86c   :  { %s2777_s6 = scalar_lea.hbm %s3344_s2, 1024 }
 0x86d   :  { %p2778_p1 = scmp.ne.s32.totalorder %s3344_s2, %s2777_s6  ;;  %p2781_p2 = scmp.lt.u32.totalorder %s2777_s6, %s3344_s2 }
 0x86f   :  { %p2783_p3 = pnand %p2781_p2, %p2778_p1 }
 0x871   :  { %2786 = shalt.err (!%p2783_p3)
}
 0x872   :  { %s2825_s3 = smov 128   ;;  %s2826_s11 = smov 8  }
 0x873   :  { %1991 = dma.vmem_to_hbm [thread:$0]  %s3292_s16, 1024, %s3344_s2, [#allocation4], %s2825_s3, %s2825_s3, %s2826_s11  }
 0x874   :  { %s2787_s13 = scalar_lea.vmem %s3294_s18, 128  ;;  %p2792_p5 = scmp.lt.s32.totalorder %s3294_s18, %s3294_s18 }
 0x875   :  { %p2788_p4 = scmp.ne.s32.totalorder %s3294_s18, %s2787_s13  ;;  %p2793_p6 = scmp.lt.s32.totalorder %s2787_s13, %s2787_s13 }
 0x877   :  { %p2794_p7 = por %p2793_p6, %p2792_p5 }
 0x879   :  { %p2795_p8 = pnand %p2794_p7, %p2788_p4 }
 0x87b   :  { %2798 = shalt.err (!%p2795_p8)
}
 0x87c   :  { %s2799_s15 = scalar_lea.hbm %s3346_s4, 128 }
 0x87d   :  { %p2800_p9 = scmp.ne.s32.totalorder %s3346_s4, %s2799_s15  ;;  %p2803_p10 = scmp.lt.u32.totalorder %s2799_s15, %s3346_s4 }
 0x87f   :  { %p2805_p11 = pnand %p2803_p10, %p2800_p9 }
 0x881   :  { %2808 = shalt.err (!%p2805_p11)
}
 0x882   :  { %2011 = dma.vmem_to_hbm [thread:$0]  %s3294_s18, 128, %s3346_s4, [#allocation9]  }
 0x883   :  { %2813 = dma.done.wait [#allocation4], 1024  }
 0x884   :  { %2814 = vsyncadd [#allocation4], 4294966272 }
 0x885   :  { %2815 = dma.done.wait [#allocation9], 256  }
 0x886   :  { %2816 = vsyncadd [#allocation9], 4294967040 }
 0x887   :  { %2021 = vsyncpa [#allocation3], 1 }
 0x888   :  { %2022 = vsyncpa [#allocation6], 1 }
 0x889   :  { %2023 = vsyncpa [#allocation4], 1 }
 0x88a   :  { %2024 = vsyncpa [#allocation9], 1 }

</bundles_post_ra>
